<compile_context>
chip_gen: v7x
topology: tpu7x:2x2x1
jax: 0.10.0
libtpu: 0.0.40
codegen_flags: <defaults>
</compile_context>

<pallas_src>
import jax
import jax.numpy as jnp
from jax.experimental import pallas as pl
from jax.experimental.pallas import tpu as pltpu

# ----------------------------- config ---------------------------------------
INPUT_DIM = 32          # input feature dimension
D_MODEL = 256           # dim_feedforward == d_model == FF inner dim
NUM_LAYERS = 2
NUM_HEADS = 4           # head split is an identity for seq_len == 1
BATCH = 16
LN_EPS = 1e-5           # PyTorch TransformerEncoderLayer layer_norm_eps

# big-weight pack layout: per layer [W_attn, W1, W2], each (D, D) bf16
MAT_ATTN = 0
MAT_W1 = 1
MAT_W2 = 2
MATS_PER_LAYER = 3
N_MATS = MATS_PER_LAYER * NUM_LAYERS                     # 6

# vector-pack row layout (every row has length D_MODEL, f32)
VEC_BIN_POS = 0                      # b_in + pos (folded host-side)
VEC_WOUT = 1                         # W_out stored as a (1, D) row
VEC_BOUT = 2                         # b_out broadcast across the row
VEC_LAYER0 = 3                       # per-layer block starts here
VEC_PER_LAYER = 7                    # [b_attn, g1, be1, b1, b2, g2, be2]
N_VEC = VEC_LAYER0 + VEC_PER_LAYER * NUM_LAYERS          # 17


# ----------------------------- kernel ---------------------------------------
def transformer_kernel(x_ref, win_ref, wbig_ref, vec_ref, o_ref):
    # input projection + (b_in + pos); x arrives pre-cast to bf16, f32 accum.
    y = jnp.dot(x_ref[...], win_ref[...], preferred_element_type=jnp.float32)
    y = y + vec_ref[VEC_BIN_POS:VEC_BIN_POS + 1, :]

    def layer_norm(v, g, b):
        mu = jnp.mean(v, axis=-1, keepdims=True)
        d = v - mu                                   # computed once, reused
        var = jnp.mean(d * d, axis=-1, keepdims=True)
        return d * jax.lax.rsqrt(var + LN_EPS) * g + b

    for l in range(NUM_LAYERS):
        base = VEC_LAYER0 + l * VEC_PER_LAYER
        b_attn = vec_ref[base + 0:base + 1, :]
        g1     = vec_ref[base + 1:base + 2, :]
        be1    = vec_ref[base + 2:base + 3, :]
        b1     = vec_ref[base + 3:base + 4, :]
        b2     = vec_ref[base + 4:base + 5, :]
        g2     = vec_ref[base + 5:base + 6, :]
        be2    = vec_ref[base + 6:base + 7, :]

        mbase = MATS_PER_LAYER * l

        # --- self-attention, fused: attn = y @ (Wv@Wo) + (bv@Wo + bo)
        attn = jnp.dot(y.astype(jnp.bfloat16), wbig_ref[mbase + MAT_ATTN],
                       preferred_element_type=jnp.float32) + b_attn
        y = layer_norm(y + attn, g1, be1)

        # --- feedforward (ReLU, PyTorch default activation)
        h = jnp.dot(y.astype(jnp.bfloat16), wbig_ref[mbase + MAT_W1],
                    preferred_element_type=jnp.float32) + b1
        h = jnp.maximum(h, 0.0)
        ff = jnp.dot(h.astype(jnp.bfloat16), wbig_ref[mbase + MAT_W2],
                     preferred_element_type=jnp.float32) + b2
        y = layer_norm(y + ff, g2, be2)

    # global avg pool over seq_len==1 is identity; output projection done on
    # the VPU/XLU (multiply + lane reduction) instead of a 1-lane MXU matmul.
    # TODO(synk): if tile_b is ever grown (>= 256 rows), switch to a
    # lane-dense (1, tile_b) output layout to avoid masked 1-lane stores.
    w_out = vec_ref[VEC_WOUT:VEC_WOUT + 1, :]             # (1, D)
    b_out = vec_ref[VEC_BOUT:VEC_BOUT + 1, 0:1]           # (1, 1)
    o_ref[...] = jnp.sum(y * w_out, axis=-1, keepdims=True) + b_out


# ----------------------------- wrapper ---------------------------------------
def _choose_batch_tiling(batch):
    """Single grid step for small batches: the kernel is weight-DMA bound, so
    splitting the batch only duplicates the ~800 KiB broadcast-weight DMA and
    the per-step pipeline prologue.  Tile only when every tile has >= 256 rows
    (fills the 256-row MXU and amortizes the ~0.35 us/step grid overhead)."""
    for tile in (512, 256):
        if batch % tile == 0 and batch // tile >= 2:
            return batch // tile, tile
    return 1, batch


def transformer_forward(x, kp):
    B, I = x.shape
    tiles, tile_b = _choose_batch_tiling(B)

    x_bf = x.astype(jnp.bfloat16)          # host-side cast: halves the x DMA

    in_specs = [
        pl.BlockSpec((tile_b, I), lambda i: (i, 0)),            # x (bf16)
        pl.BlockSpec(kp["W_in"].shape, lambda i: (0, 0)),       # (I, D)   bf16
        pl.BlockSpec(kp["W_big"].shape, lambda i: (0, 0, 0)),   # (3L,D,D) bf16
        pl.BlockSpec(kp["vec"].shape, lambda i: (0, 0)),        # (17, D)  f32
    ]
    out_spec = pl.BlockSpec((tile_b, 1), lambda i: (i, 0))

    return pl.pallas_call(
        transformer_kernel,
        out_shape=jax.ShapeDtypeStruct((B, 1), jnp.float32),
        grid=(tiles,),
        in_specs=in_specs,
        out_specs=out_spec,
        compiler_params=pltpu.CompilerParams(
            dimension_semantics=("parallel",)),
    )(x_bf, kp["W_in"], kp["W_big"], kp["vec"])


# -------------------- host-side packing of the raw params --------------------
def pack_params(p):
    # fuse the two attention matmuls (exact for seq_len == 1)
    W_attn = jnp.einsum("lij,ljk->lik", p["Wv"], p["Wo"])            # (L, D, D)
    b_attn = jnp.einsum("lij,ljk->lik", p["bv"], p["Wo"]) + p["bo"]  # (L, 1, D)

    # one big contiguous bf16 weight slab: per layer [W_attn, W1, W2]
    mats = []
    for l in range(NUM_LAYERS):
        mats += [W_attn[l], p["W1"][l], p["W2"][l]]
    W_big = jnp.stack(mats, axis=0).astype(jnp.bfloat16)             # (3L, D, D)
    assert W_big.shape == (N_MATS, D_MODEL, D_MODEL)

    rows = [
        p["b_in"] + p["pos"],                                        # (1, D)
        p["W_out"].T,                                                # (1, D)
        jnp.full((1, D_MODEL), p["b_out"][0, 0], jnp.float32),       # (1, D)
    ]
    for l in range(NUM_LAYERS):
        rows += [b_attn[l], p["g1"][l], p["be1"][l], p["b1"][l],
                 p["b2"][l], p["g2"][l], p["be2"][l]]
    vec = jnp.concatenate(rows, axis=0).astype(jnp.float32)          # (17, D)
    assert vec.shape == (N_VEC, D_MODEL)

    return {
        "W_in":  p["W_in"].astype(jnp.bfloat16),
        "W_big": W_big,
        "vec":   vec,
    }


# ----------------------------- reference (plain JAX, f32) --------------------
def transformer_reference(x, p):
    y = x @ p["W_in"] + p["b_in"] + p["pos"]

    def layer_norm(v, g, b):
        mu = jnp.mean(v, axis=-1, keepdims=True)
        var = jnp.mean(jnp.square(v - mu), axis=-1, keepdims=True)
        return (v - mu) * jax.lax.rsqrt(var + LN_EPS) * g + b

    for l in range(NUM_LAYERS):
        v = y @ p["Wv"][l] + p["bv"][l]
        attn = v @ p["Wo"][l] + p["bo"][l]
        y = layer_norm(y + attn, p["g1"][l], p["be1"][l])
        h = jnp.maximum(y @ p["W1"][l] + p["b1"][l], 0.0)
        ff = h @ p["W2"][l] + p["b2"][l]
        y = layer_norm(y + ff, p["g2"][l], p["be2"][l])
    return y @ p["W_out"] + p["b_out"]


# ----------------------------- param init ------------------------------------
def init_params(key):
    ks = jax.random.split(key, 16)
    s = 0.05
    L, I, D = NUM_LAYERS, INPUT_DIM, D_MODEL
    return {
        "W_in":  jax.random.normal(ks[0], (I, D), jnp.float32) * s,
        "b_in":  jax.random.normal(ks[1], (1, D), jnp.float32) * s,
        "pos":   jax.random.normal(ks[2], (1, D), jnp.float32),   # randn in module
        "Wv":    jax.random.normal(ks[3], (L, D, D), jnp.float32) * s,
        "bv":    jax.random.normal(ks[4], (L, 1, D), jnp.float32) * s,
        "Wo":    jax.random.normal(ks[5], (L, D, D), jnp.float32) * s,
        "bo":    jax.random.normal(ks[6], (L, 1, D), jnp.float32) * s,
        "g1":    jnp.ones((L, 1, D), jnp.float32),
        "be1":   jnp.zeros((L, 1, D), jnp.float32),
        "W1":    jax.random.normal(ks[7], (L, D, D), jnp.float32) * s,
        "b1":    jax.random.normal(ks[8], (L, 1, D), jnp.float32) * s,
        "W2":    jax.random.normal(ks[9], (L, D, D), jnp.float32) * s,
        "b2":    jax.random.normal(ks[10], (L, 1, D), jnp.float32) * s,
        "g2":    jnp.ones((L, 1, D), jnp.float32),
        "be2":   jnp.zeros((L, 1, D), jnp.float32),
        "W_out": jax.random.normal(ks[11], (D, 1), jnp.float32) * s,
        "b_out": jax.random.normal(ks[12], (1, 1), jnp.float32) * s,
    }


# ----------------------------- main ------------------------------------------
if __name__ == "__main__":
    key = jax.random.PRNGKey(0)
    pkey, xkey = jax.random.split(key)
    raw = init_params(pkey)
    kparams = pack_params(raw)
    x = jax.random.normal(xkey, (BATCH, INPUT_DIM), jnp.float32)

    out = transformer_forward(x, kparams)
    out = jax.block_until_ready(out)

    ref = transformer_reference(x, raw)
    assert out.shape == (BATCH, 1), out.shape
    # bf16 weights/inputs + f32 accumulation -> slightly looser tolerance
    assert jnp.allclose(out, ref, rtol=2e-2, atol=2e-2), (
        f"max abs err {jnp.max(jnp.abs(out - ref))}")

    print("KERNEL_OK")
</pallas_src>

<mosaic_0001>
module attributes {stable_mosaic.version = 11 : i64} {
  func.func @transformer_kernel(%arg0: i32, %arg1: memref<16x32xbf16, #tpu.memory_space<vmem>>, %arg2: memref<32x256xbf16, #tpu.memory_space<vmem>>, %arg3: memref<6x256x256xbf16, #tpu.memory_space<vmem>>, %arg4: memref<17x256xf32, #tpu.memory_space<vmem>>, %arg5: memref<16x1xf32, #tpu.memory_space<vmem>>) attributes {dimension_semantics = [#tpu.dimension_semantics<parallel>], iteration_bounds = array<i64: 1>, scalar_prefetch = 0 : i64, scratch_operands = 0 : i64, tpu.core_type = #tpu.core_type<tc>, window_params = [{transform_indices = @transform_0, window_bounds = array<i64: 16, 32>}, {pipeline_mode = #tpu.pipeline_mode<synchronous>, transform_indices = @transform_1, window_bounds = array<i64: 32, 256>}, {pipeline_mode = #tpu.pipeline_mode<synchronous>, transform_indices = @transform_2, window_bounds = array<i64: 6, 256, 256>}, {pipeline_mode = #tpu.pipeline_mode<synchronous>, transform_indices = @transform_3, window_bounds = array<i64: 17, 256>}, {transform_indices = @transform_4, window_bounds = array<i64: 16, 1>}]} {
    %c0 = arith.constant 0 : index
    %c0_0 = arith.constant 0 : index
    %0 = vector.load %arg1[%c0, %c0_0] : memref<16x32xbf16, #tpu.memory_space<vmem>>, vector<16x32xbf16>
    %c0_1 = arith.constant 0 : index
    %c0_2 = arith.constant 0 : index
    %1 = vector.load %arg2[%c0_1, %c0_2] : memref<32x256xbf16, #tpu.memory_space<vmem>>, vector<32x256xbf16>
    %cst = arith.constant dense<0.000000e+00> : vector<16x256xf32>
    %2 = tpu.matmul %0, %1, %cst {dimension_numbers = #tpu.dot_dimension_numbers<[1], [0], [0], [1], [0, 0, 1, 1], [], []>} : vector<16x32xbf16>, vector<32x256xbf16>, vector<16x256xf32> -> vector<16x256xf32>
    %c0_3 = arith.constant 0 : index
    %c0_4 = arith.constant 0 : index
    %3 = vector.load %arg4[%c0_3, %c0_4] : memref<17x256xf32, #tpu.memory_space<vmem>>, vector<1x256xf32>
    %4 = vector.broadcast %3 : vector<1x256xf32> to vector<16x256xf32>
    %5 = arith.addf %2, %4 : vector<16x256xf32>
    %c3 = arith.constant 3 : index
    %c0_5 = arith.constant 0 : index
    %6 = vector.load %arg4[%c3, %c0_5] : memref<17x256xf32, #tpu.memory_space<vmem>>, vector<1x256xf32>
    %c4 = arith.constant 4 : index
    %c0_6 = arith.constant 0 : index
    %7 = vector.load %arg4[%c4, %c0_6] : memref<17x256xf32, #tpu.memory_space<vmem>>, vector<1x256xf32>
    %c5 = arith.constant 5 : index
    %c0_7 = arith.constant 0 : index
    %8 = vector.load %arg4[%c5, %c0_7] : memref<17x256xf32, #tpu.memory_space<vmem>>, vector<1x256xf32>
    %c6 = arith.constant 6 : index
    %c0_8 = arith.constant 0 : index
    %9 = vector.load %arg4[%c6, %c0_8] : memref<17x256xf32, #tpu.memory_space<vmem>>, vector<1x256xf32>
    %c7 = arith.constant 7 : index
    %c0_9 = arith.constant 0 : index
    %10 = vector.load %arg4[%c7, %c0_9] : memref<17x256xf32, #tpu.memory_space<vmem>>, vector<1x256xf32>
    %c8 = arith.constant 8 : index
    %c0_10 = arith.constant 0 : index
    %11 = vector.load %arg4[%c8, %c0_10] : memref<17x256xf32, #tpu.memory_space<vmem>>, vector<1x256xf32>
    %c9 = arith.constant 9 : index
    %c0_11 = arith.constant 0 : index
    %12 = vector.load %arg4[%c9, %c0_11] : memref<17x256xf32, #tpu.memory_space<vmem>>, vector<1x256xf32>
    %13 = arith.truncf %5 : vector<16x256xf32> to vector<16x256xbf16>
    %c0_12 = arith.constant 0 : index
    %c0_13 = arith.constant 0 : index
    %c0_14 = arith.constant 0 : index
    %14 = vector.load %arg3[%c0_12, %c0_13, %c0_14] : memref<6x256x256xbf16, #tpu.memory_space<vmem>>, vector<1x256x256xbf16>
    %15 = vector.shape_cast %14 : vector<1x256x256xbf16> to vector<256x256xbf16>
    %cst_15 = arith.constant dense<0.000000e+00> : vector<16x256xf32>
    %16 = tpu.matmul %13, %15, %cst_15 {dimension_numbers = #tpu.dot_dimension_numbers<[1], [0], [0], [1], [0, 0, 1, 1], [], []>} : vector<16x256xbf16>, vector<256x256xbf16>, vector<16x256xf32> -> vector<16x256xf32>
    %17 = vector.broadcast %6 : vector<1x256xf32> to vector<16x256xf32>
    %18 = arith.addf %16, %17 : vector<16x256xf32>
    %19 = arith.addf %5, %18 : vector<16x256xf32>
    %cst_16 = arith.constant dense<0.000000e+00> : vector<16xf32>
    %20 = vector.multi_reduction <add>, %19, %cst_16 [1] : vector<16x256xf32> to vector<16xf32>
    %21 = vector.shape_cast %20 : vector<16xf32> to vector<16x1xf32>
    %cst_17 = arith.constant 2.560000e+02 : f32
    %22 = vector.broadcast %cst_17 : f32 to vector<16x1xf32>
    %23 = arith.divf %21, %22 : vector<16x1xf32>
    %24 = vector.broadcast %23 : vector<16x1xf32> to vector<16x256xf32>
    %25 = arith.subf %19, %24 : vector<16x256xf32>
    %26 = arith.mulf %25, %25 : vector<16x256xf32>
    %cst_18 = arith.constant dense<0.000000e+00> : vector<16xf32>
    %27 = vector.multi_reduction <add>, %26, %cst_18 [1] : vector<16x256xf32> to vector<16xf32>
    %28 = vector.shape_cast %27 : vector<16xf32> to vector<16x1xf32>
    %cst_19 = arith.constant 2.560000e+02 : f32
    %29 = vector.broadcast %cst_19 : f32 to vector<16x1xf32>
    %30 = arith.divf %28, %29 : vector<16x1xf32>
    %cst_20 = arith.constant 9.99999974E-6 : f32
    %31 = vector.broadcast %cst_20 : f32 to vector<16x1xf32>
    %32 = arith.addf %30, %31 : vector<16x1xf32>
    %33 = math.rsqrt %32 : vector<16x1xf32>
    %34 = vector.broadcast %33 : vector<16x1xf32> to vector<16x256xf32>
    %35 = arith.mulf %25, %34 : vector<16x256xf32>
    %36 = vector.broadcast %7 : vector<1x256xf32> to vector<16x256xf32>
    %37 = arith.mulf %35, %36 : vector<16x256xf32>
    %38 = vector.broadcast %8 : vector<1x256xf32> to vector<16x256xf32>
    %39 = arith.addf %37, %38 : vector<16x256xf32>
    %40 = arith.truncf %39 : vector<16x256xf32> to vector<16x256xbf16>
    %c1 = arith.constant 1 : index
    %c0_21 = arith.constant 0 : index
    %c0_22 = arith.constant 0 : index
    %41 = vector.load %arg3[%c1, %c0_21, %c0_22] : memref<6x256x256xbf16, #tpu.memory_space<vmem>>, vector<1x256x256xbf16>
    %42 = vector.shape_cast %41 : vector<1x256x256xbf16> to vector<256x256xbf16>
    %cst_23 = arith.constant dense<0.000000e+00> : vector<16x256xf32>
    %43 = tpu.matmul %40, %42, %cst_23 {dimension_numbers = #tpu.dot_dimension_numbers<[1], [0], [0], [1], [0, 0, 1, 1], [], []>} : vector<16x256xbf16>, vector<256x256xbf16>, vector<16x256xf32> -> vector<16x256xf32>
    %44 = vector.broadcast %9 : vector<1x256xf32> to vector<16x256xf32>
    %45 = arith.addf %43, %44 : vector<16x256xf32>
    %cst_24 = arith.constant 0.000000e+00 : f32
    %46 = vector.broadcast %cst_24 : f32 to vector<16x256xf32>
    %47 = arith.maximumf %45, %46 : vector<16x256xf32>
    %48 = arith.truncf %47 : vector<16x256xf32> to vector<16x256xbf16>
    %c2 = arith.constant 2 : index
    %c0_25 = arith.constant 0 : index
    %c0_26 = arith.constant 0 : index
    %49 = vector.load %arg3[%c2, %c0_25, %c0_26] : memref<6x256x256xbf16, #tpu.memory_space<vmem>>, vector<1x256x256xbf16>
    %50 = vector.shape_cast %49 : vector<1x256x256xbf16> to vector<256x256xbf16>
    %cst_27 = arith.constant dense<0.000000e+00> : vector<16x256xf32>
    %51 = tpu.matmul %48, %50, %cst_27 {dimension_numbers = #tpu.dot_dimension_numbers<[1], [0], [0], [1], [0, 0, 1, 1], [], []>} : vector<16x256xbf16>, vector<256x256xbf16>, vector<16x256xf32> -> vector<16x256xf32>
    %52 = vector.broadcast %10 : vector<1x256xf32> to vector<16x256xf32>
    %53 = arith.addf %51, %52 : vector<16x256xf32>
    %54 = arith.addf %39, %53 : vector<16x256xf32>
    %cst_28 = arith.constant dense<0.000000e+00> : vector<16xf32>
    %55 = vector.multi_reduction <add>, %54, %cst_28 [1] : vector<16x256xf32> to vector<16xf32>
    %56 = vector.shape_cast %55 : vector<16xf32> to vector<16x1xf32>
    %cst_29 = arith.constant 2.560000e+02 : f32
    %57 = vector.broadcast %cst_29 : f32 to vector<16x1xf32>
    %58 = arith.divf %56, %57 : vector<16x1xf32>
    %59 = vector.broadcast %58 : vector<16x1xf32> to vector<16x256xf32>
    %60 = arith.subf %54, %59 : vector<16x256xf32>
    %61 = arith.mulf %60, %60 : vector<16x256xf32>
    %cst_30 = arith.constant dense<0.000000e+00> : vector<16xf32>
    %62 = vector.multi_reduction <add>, %61, %cst_30 [1] : vector<16x256xf32> to vector<16xf32>
    %63 = vector.shape_cast %62 : vector<16xf32> to vector<16x1xf32>
    %cst_31 = arith.constant 2.560000e+02 : f32
    %64 = vector.broadcast %cst_31 : f32 to vector<16x1xf32>
    %65 = arith.divf %63, %64 : vector<16x1xf32>
    %cst_32 = arith.constant 9.99999974E-6 : f32
    %66 = vector.broadcast %cst_32 : f32 to vector<16x1xf32>
    %67 = arith.addf %65, %66 : vector<16x1xf32>
    %68 = math.rsqrt %67 : vector<16x1xf32>
    %69 = vector.broadcast %68 : vector<16x1xf32> to vector<16x256xf32>
    %70 = arith.mulf %60, %69 : vector<16x256xf32>
    %71 = vector.broadcast %11 : vector<1x256xf32> to vector<16x256xf32>
    %72 = arith.mulf %70, %71 : vector<16x256xf32>
    %73 = vector.broadcast %12 : vector<1x256xf32> to vector<16x256xf32>
    %74 = arith.addf %72, %73 : vector<16x256xf32>
    %c10 = arith.constant 10 : index
    %c0_33 = arith.constant 0 : index
    %75 = vector.load %arg4[%c10, %c0_33] : memref<17x256xf32, #tpu.memory_space<vmem>>, vector<1x256xf32>
    %c11 = arith.constant 11 : index
    %c0_34 = arith.constant 0 : index
    %76 = vector.load %arg4[%c11, %c0_34] : memref<17x256xf32, #tpu.memory_space<vmem>>, vector<1x256xf32>
    %c12 = arith.constant 12 : index
    %c0_35 = arith.constant 0 : index
    %77 = vector.load %arg4[%c12, %c0_35] : memref<17x256xf32, #tpu.memory_space<vmem>>, vector<1x256xf32>
    %c13 = arith.constant 13 : index
    %c0_36 = arith.constant 0 : index
    %78 = vector.load %arg4[%c13, %c0_36] : memref<17x256xf32, #tpu.memory_space<vmem>>, vector<1x256xf32>
    %c14 = arith.constant 14 : index
    %c0_37 = arith.constant 0 : index
    %79 = vector.load %arg4[%c14, %c0_37] : memref<17x256xf32, #tpu.memory_space<vmem>>, vector<1x256xf32>
    %c15 = arith.constant 15 : index
    %c0_38 = arith.constant 0 : index
    %80 = vector.load %arg4[%c15, %c0_38] : memref<17x256xf32, #tpu.memory_space<vmem>>, vector<1x256xf32>
    %c16 = arith.constant 16 : index
    %c0_39 = arith.constant 0 : index
    %81 = vector.load %arg4[%c16, %c0_39] : memref<17x256xf32, #tpu.memory_space<vmem>>, vector<1x256xf32>
    %82 = arith.truncf %74 : vector<16x256xf32> to vector<16x256xbf16>
    %c3_40 = arith.constant 3 : index
    %c0_41 = arith.constant 0 : index
    %c0_42 = arith.constant 0 : index
    %83 = vector.load %arg3[%c3_40, %c0_41, %c0_42] : memref<6x256x256xbf16, #tpu.memory_space<vmem>>, vector<1x256x256xbf16>
    %84 = vector.shape_cast %83 : vector<1x256x256xbf16> to vector<256x256xbf16>
    %cst_43 = arith.constant dense<0.000000e+00> : vector<16x256xf32>
    %85 = tpu.matmul %82, %84, %cst_43 {dimension_numbers = #tpu.dot_dimension_numbers<[1], [0], [0], [1], [0, 0, 1, 1], [], []>} : vector<16x256xbf16>, vector<256x256xbf16>, vector<16x256xf32> -> vector<16x256xf32>
    %86 = vector.broadcast %75 : vector<1x256xf32> to vector<16x256xf32>
    %87 = arith.addf %85, %86 : vector<16x256xf32>
    %88 = arith.addf %74, %87 : vector<16x256xf32>
    %cst_44 = arith.constant dense<0.000000e+00> : vector<16xf32>
    %89 = vector.multi_reduction <add>, %88, %cst_44 [1] : vector<16x256xf32> to vector<16xf32>
    %90 = vector.shape_cast %89 : vector<16xf32> to vector<16x1xf32>
    %cst_45 = arith.constant 2.560000e+02 : f32
    %91 = vector.broadcast %cst_45 : f32 to vector<16x1xf32>
    %92 = arith.divf %90, %91 : vector<16x1xf32>
    %93 = vector.broadcast %92 : vector<16x1xf32> to vector<16x256xf32>
    %94 = arith.subf %88, %93 : vector<16x256xf32>
    %95 = arith.mulf %94, %94 : vector<16x256xf32>
    %cst_46 = arith.constant dense<0.000000e+00> : vector<16xf32>
    %96 = vector.multi_reduction <add>, %95, %cst_46 [1] : vector<16x256xf32> to vector<16xf32>
    %97 = vector.shape_cast %96 : vector<16xf32> to vector<16x1xf32>
    %cst_47 = arith.constant 2.560000e+02 : f32
    %98 = vector.broadcast %cst_47 : f32 to vector<16x1xf32>
    %99 = arith.divf %97, %98 : vector<16x1xf32>
    %cst_48 = arith.constant 9.99999974E-6 : f32
    %100 = vector.broadcast %cst_48 : f32 to vector<16x1xf32>
    %101 = arith.addf %99, %100 : vector<16x1xf32>
    %102 = math.rsqrt %101 : vector<16x1xf32>
    %103 = vector.broadcast %102 : vector<16x1xf32> to vector<16x256xf32>
    %104 = arith.mulf %94, %103 : vector<16x256xf32>
    %105 = vector.broadcast %76 : vector<1x256xf32> to vector<16x256xf32>
    %106 = arith.mulf %104, %105 : vector<16x256xf32>
    %107 = vector.broadcast %77 : vector<1x256xf32> to vector<16x256xf32>
    %108 = arith.addf %106, %107 : vector<16x256xf32>
    %109 = arith.truncf %108 : vector<16x256xf32> to vector<16x256xbf16>
    %c4_49 = arith.constant 4 : index
    %c0_50 = arith.constant 0 : index
    %c0_51 = arith.constant 0 : index
    %110 = vector.load %arg3[%c4_49, %c0_50, %c0_51] : memref<6x256x256xbf16, #tpu.memory_space<vmem>>, vector<1x256x256xbf16>
    %111 = vector.shape_cast %110 : vector<1x256x256xbf16> to vector<256x256xbf16>
    %cst_52 = arith.constant dense<0.000000e+00> : vector<16x256xf32>
    %112 = tpu.matmul %109, %111, %cst_52 {dimension_numbers = #tpu.dot_dimension_numbers<[1], [0], [0], [1], [0, 0, 1, 1], [], []>} : vector<16x256xbf16>, vector<256x256xbf16>, vector<16x256xf32> -> vector<16x256xf32>
    %113 = vector.broadcast %78 : vector<1x256xf32> to vector<16x256xf32>
    %114 = arith.addf %112, %113 : vector<16x256xf32>
    %cst_53 = arith.constant 0.000000e+00 : f32
    %115 = vector.broadcast %cst_53 : f32 to vector<16x256xf32>
    %116 = arith.maximumf %114, %115 : vector<16x256xf32>
    %117 = arith.truncf %116 : vector<16x256xf32> to vector<16x256xbf16>
    %c5_54 = arith.constant 5 : index
    %c0_55 = arith.constant 0 : index
    %c0_56 = arith.constant 0 : index
    %118 = vector.load %arg3[%c5_54, %c0_55, %c0_56] : memref<6x256x256xbf16, #tpu.memory_space<vmem>>, vector<1x256x256xbf16>
    %119 = vector.shape_cast %118 : vector<1x256x256xbf16> to vector<256x256xbf16>
    %cst_57 = arith.constant dense<0.000000e+00> : vector<16x256xf32>
    %120 = tpu.matmul %117, %119, %cst_57 {dimension_numbers = #tpu.dot_dimension_numbers<[1], [0], [0], [1], [0, 0, 1, 1], [], []>} : vector<16x256xbf16>, vector<256x256xbf16>, vector<16x256xf32> -> vector<16x256xf32>
    %121 = vector.broadcast %79 : vector<1x256xf32> to vector<16x256xf32>
    %122 = arith.addf %120, %121 : vector<16x256xf32>
    %123 = arith.addf %108, %122 : vector<16x256xf32>
    %cst_58 = arith.constant dense<0.000000e+00> : vector<16xf32>
    %124 = vector.multi_reduction <add>, %123, %cst_58 [1] : vector<16x256xf32> to vector<16xf32>
    %125 = vector.shape_cast %124 : vector<16xf32> to vector<16x1xf32>
    %cst_59 = arith.constant 2.560000e+02 : f32
    %126 = vector.broadcast %cst_59 : f32 to vector<16x1xf32>
    %127 = arith.divf %125, %126 : vector<16x1xf32>
    %128 = vector.broadcast %127 : vector<16x1xf32> to vector<16x256xf32>
    %129 = arith.subf %123, %128 : vector<16x256xf32>
    %130 = arith.mulf %129, %129 : vector<16x256xf32>
    %cst_60 = arith.constant dense<0.000000e+00> : vector<16xf32>
    %131 = vector.multi_reduction <add>, %130, %cst_60 [1] : vector<16x256xf32> to vector<16xf32>
    %132 = vector.shape_cast %131 : vector<16xf32> to vector<16x1xf32>
    %cst_61 = arith.constant 2.560000e+02 : f32
    %133 = vector.broadcast %cst_61 : f32 to vector<16x1xf32>
    %134 = arith.divf %132, %133 : vector<16x1xf32>
    %cst_62 = arith.constant 9.99999974E-6 : f32
    %135 = vector.broadcast %cst_62 : f32 to vector<16x1xf32>
    %136 = arith.addf %134, %135 : vector<16x1xf32>
    %137 = math.rsqrt %136 : vector<16x1xf32>
    %138 = vector.broadcast %137 : vector<16x1xf32> to vector<16x256xf32>
    %139 = arith.mulf %129, %138 : vector<16x256xf32>
    %140 = vector.broadcast %80 : vector<1x256xf32> to vector<16x256xf32>
    %141 = arith.mulf %139, %140 : vector<16x256xf32>
    %142 = vector.broadcast %81 : vector<1x256xf32> to vector<16x256xf32>
    %143 = arith.addf %141, %142 : vector<16x256xf32>
    %c1_63 = arith.constant 1 : index
    %c0_64 = arith.constant 0 : index
    %144 = vector.load %arg4[%c1_63, %c0_64] : memref<17x256xf32, #tpu.memory_space<vmem>>, vector<1x256xf32>
    %c2_65 = arith.constant 2 : index
    %c0_66 = arith.constant 0 : index
    %145 = vector.load %arg4[%c2_65, %c0_66] : memref<17x256xf32, #tpu.memory_space<vmem>>, vector<1x1xf32>
    %146 = vector.broadcast %144 : vector<1x256xf32> to vector<16x256xf32>
    %147 = arith.mulf %143, %146 : vector<16x256xf32>
    %cst_67 = arith.constant dense<0.000000e+00> : vector<16xf32>
    %148 = vector.multi_reduction <add>, %147, %cst_67 [1] : vector<16x256xf32> to vector<16xf32>
    %149 = vector.shape_cast %148 : vector<16xf32> to vector<16x1xf32>
    %150 = vector.broadcast %145 : vector<1x1xf32> to vector<16x1xf32>
    %151 = arith.addf %149, %150 : vector<16x1xf32>
    %c0_68 = arith.constant 0 : index
    %c0_69 = arith.constant 0 : index
    %152 = vector.load %arg5[%c0_68, %c0_69] : memref<16x1xf32, #tpu.memory_space<vmem>>, vector<16x1xf32>
    tpu.vector_store %arg5[%c0_68, %c0_69], %151 {strides = array<i32>} : memref<16x1xf32, #tpu.memory_space<vmem>>, vector<16x1xf32>,
    return
  }
  func.func @transform_0(%arg0: i32) -> (i32, i32) {
    %c0_i32 = arith.constant 0 : i32
    %c0_i32_0 = arith.constant 0 : i32
    return %arg0, %c0_i32 : i32, i32
  }
  func.func @transform_1(%arg0: i32) -> (i32, i32) {
    %c0_i32 = arith.constant 0 : i32
    %c0_i32_0 = arith.constant 0 : i32
    %c0_i32_1 = arith.constant 0 : i32
    return %c0_i32, %c0_i32_0 : i32, i32
  }
  func.func @transform_2(%arg0: i32) -> (i32, i32, i32) {
    %c0_i32 = arith.constant 0 : i32
    %c0_i32_0 = arith.constant 0 : i32
    %c0_i32_1 = arith.constant 0 : i32
    %c0_i32_2 = arith.constant 0 : i32
    return %c0_i32, %c0_i32_0, %c0_i32_1 : i32, i32, i32
  }
  func.func @transform_3(%arg0: i32) -> (i32, i32) {
    %c0_i32 = arith.constant 0 : i32
    %c0_i32_0 = arith.constant 0 : i32
    %c0_i32_1 = arith.constant 0 : i32
    return %c0_i32, %c0_i32_0 : i32, i32
  }
  func.func @transform_4(%arg0: i32) -> (i32, i32) {
    %c0_i32 = arith.constant 0 : i32
    %c0_i32_0 = arith.constant 0 : i32
    return %arg0, %c0_i32 : i32, i32
  }
}

</mosaic_0001>

<bundles_post_ra>
// kernel: tpu_custom_call.1
= control target key start
LH: loop header
LB: loop body
LE: loop exit
PB: predicated region body
PF: predicated region fallthrough
CT: control target
= control target key end

     0   :  { %9 = vsyncpa [#allocation3], 0  ;;  %s2786_s0 = inlined_call_operand.hbm [shape: bf16[16,32], index: 0, kind: input, shape index: {}]   ;;  %s2787_s1 = inlined_call_operand.hbm [shape: bf16[32,256], index: 1, kind: input, shape index: {}]   ;;  %s2788_s2 = inlined_call_operand.hbm [shape: bf16[6,256,256], index: 2, kind: input, shape index: {}]   ;;  %s2789_s3 = inlined_call_operand.hbm [shape: f32[17,256], index: 3, kind: input, shape index: {}]   ;;  %s2790_s4 = inlined_call_operand.vmem [shape: f32[16,1], index: 4, kind: output, shape index: {}]  }
   0x1   :  { %10 = vsyncpa [#allocation5], 0 }
   0x2   :  { %11 = vsyncpa [#allocation8], 0  ;;  %s2607_s15 = smov [#allocation4]   ;;  %s2513_s19 = scalar_lea.hbm %s2787_s1, 512 }
   0x3   :  { %s29_s16 = sshll.u32 %s2607_s15, 4  ;;  %p2514_p0 = scmp.ne.s32.totalorder %s2787_s1, %s2513_s19  ;;  %s30_s16 = int_to_ptr.vmem [resolvable:$true] %s29_s16 }
   0x4   :  { %p2517_p1 = scmp.lt.u32.totalorder %s2513_s19, %s2787_s1 }
   0x6   :  { %p2519_p2 = pnand %p2517_p1, %p2514_p0 }
   0x8   :  { %2522 = shalt.err (!%p2519_p2)
}
   0x9   :  { %s2523_s24 = scalar_lea.vmem %s30_s16, 512  ;;  %p2528_p4 = scmp.lt.s32.totalorder %s30_s16, %s30_s16 }
   0xa   :  { %p2524_p3 = scmp.ne.s32.totalorder %s30_s16, %s2523_s24  ;;  %p2529_p5 = scmp.lt.s32.totalorder %s2523_s24, %s2523_s24 }
   0xc   :  { %p2530_p6 = por %p2529_p5, %p2528_p4 }
   0xe   :  { %p2531_p7 = pnand %p2530_p6, %p2524_p3 }
  0x10   :  { %2534 = shalt.err (!%p2531_p7)
}
  0x11   :  { %s2608_s25 = smov 128   ;;  %s2609_s26 = smov 8  }
  0x12   :  { %35 = dma.hbm_to_vmem [thread:$0]  %s2787_s1, 512, %s30_s16, [#allocation5], %s2608_s25, %s2608_s25, %s2609_s26  }
  0x13   :  { %s2610_s29 = smov [#allocation2]   ;;  %s2535_s7 = scalar_lea.hbm %s2786_s0, 128 }
  0x14   :  { %s17_s30 = sshll.u32 %s2610_s29, 4  ;;  %p2536_p8 = scmp.ne.s32.totalorder %s2786_s0, %s2535_s7  ;;  %s18_s30 = int_to_ptr.vmem [resolvable:$true] %s17_s30 }
  0x15   :  { %p2539_p9 = scmp.lt.u32.totalorder %s2535_s7, %s2786_s0 }
  0x17   :  { %p2541_p10 = pnand %p2539_p9, %p2536_p8 }
  0x19   :  { %2544 = shalt.err (!%p2541_p10)
}
  0x1a   :  { %s2545_s12 = scalar_lea.vmem %s18_s30, 128  ;;  %p2550_p12 = scmp.lt.s32.totalorder %s18_s30, %s18_s30 }
  0x1b   :  { %p2546_p11 = scmp.ne.s32.totalorder %s18_s30, %s2545_s12  ;;  %p2551_p13 = scmp.lt.s32.totalorder %s2545_s12, %s2545_s12 }
  0x1d   :  { %p2552_p0 = por %p2551_p13, %p2550_p12 }
  0x1f   :  { %p2553_p1 = pnand %p2552_p0, %p2546_p11 }
  0x21   :  { %2556 = shalt.err (!%p2553_p1)
}
  0x22   :  { %s2611_s1 = smov 64   ;;  %s2612_s13 = smov 4  }
  0x23   :  { %23 = dma.hbm_to_vmem [thread:$0]  %s2786_s0, 128, %s18_s30, [#allocation3], %s2611_s1, %s2611_s1, %s2612_s13  }
  0x24   :  { %s2613_s16 = smov [#allocation6]   ;;  %s2614_s18 = smov [#allocation7]  }
  0x25   :  { %s41_s17 = sshll.u32 %s2613_s16, 4  ;;  %s53_s19 = sshll.u32 %s2614_s18, 4  ;;  %s42_s17 = int_to_ptr.vmem [resolvable:$true] %s41_s17  ;;  %s2670_s19 = int_to_ptr.vmem [resolvable:$true] %s53_s19 }
  0x26   :  { %s2557_s22 = scalar_lea.hbm %s2788_s2, 24576 }
  0x27   :  { %p2558_p2 = scmp.ne.s32.totalorder %s2788_s2, %s2557_s22  ;;  %p2561_p3 = scmp.lt.u32.totalorder %s2557_s22, %s2788_s2 }
  0x29   :  { %p2563_p4 = pnand %p2561_p3, %p2558_p2 }
  0x2b   :  { %2566 = shalt.err (!%p2563_p4)
}
  0x2c   :  { %s2567_s0 = scalar_lea.vmem %s42_s17, 24576  ;;  %p2572_p6 = scmp.lt.s32.totalorder %s42_s17, %s42_s17 }
  0x2d   :  { %p2568_p5 = scmp.ne.s32.totalorder %s42_s17, %s2567_s0  ;;  %p2573_p7 = scmp.lt.s32.totalorder %s2567_s0, %s2567_s0 }
  0x2f   :  { %p2574_p8 = por %p2573_p7, %p2572_p6 }
  0x31   :  { %p2575_p9 = pnand %p2574_p8, %p2568_p5 }
  0x33   :  { %2578 = shalt.err (!%p2575_p9)
}
  0x34   :  { %47 = dma.hbm_to_vmem [thread:$0]  %s2788_s2, 24576, %s42_s17, [#allocation5], %s2608_s25, %s2608_s25, %s2609_s26  }
  0x35   :  { %s2579_s7 = scalar_lea.hbm %s2789_s3, 768 }
  0x36   :  { %p2580_p10 = scmp.ne.s32.totalorder %s2789_s3, %s2579_s7  ;;  %p2583_p11 = scmp.lt.u32.totalorder %s2579_s7, %s2789_s3 }
  0x38   :  { %p2585_p12 = pnand %p2583_p11, %p2580_p10 }
  0x3a   :  { %2588 = shalt.err (!%p2585_p12)
}
  0x3b   :  { %s2589_s12 = scalar_lea.vmem %s2670_s19, 768  ;;  %p2594_p0 = scmp.lt.s32.totalorder %s2670_s19, %s2670_s19 }
  0x3c   :  { %p2590_p13 = scmp.ne.s32.totalorder %s2670_s19, %s2589_s12  ;;  %p2595_p1 = scmp.lt.s32.totalorder %s2589_s12, %s2589_s12 }
  0x3e   :  { %p2596_p2 = por %p2595_p1, %p2594_p0 }
  0x40   :  { %p2597_p3 = pnand %p2596_p2, %p2590_p13 }
  0x42   :  { %2600 = shalt.err (!%p2597_p3)
}
  0x43   :  { %s2615_s2 = smov 256   ;;  %s2616_s25 = smov 16  }
  0x44   :  { %59 = dma.hbm_to_vmem [thread:$0]  %s2789_s3, 768, %s2670_s19, [#allocation8], %s2615_s2, %s2615_s2, %s2616_s25  }
  0x45   :  { %2601 = dma.done.wait [#allocation3], 128  }
  0x46   :  { %2602 = vsyncadd [#allocation3], 4294967168 }
  0x47   :  { %2603 = dma.done.wait [#allocation5], 25088  }
  0x48   :  { %2604 = vsyncadd [#allocation5], 4294942208 }
  0x49   :  { %2605 = dma.done.wait [#allocation8], 768  }
  0x4a   :  { %2606 = vsyncadd [#allocation8], 4294966528  ;;  %v2617_v0 = vmov 0   ;;  %v2202_v1 = vld [vmem:[#allocation4 + $0x4] ss:$8 sps:$4 sm:$0xff]   ;;  %v2208_v8 = vld [vmem:[#allocation2] sm:$0xff]   ;;  %v81_v38 = vlaneseq }
  0x4b   :  { %152 = vmatprep.mubr.bf16.mxu0 %v2617_v0  ;;  %v2204_v2 = vld [vmem:[#allocation4] ss:$8 sps:$4 sm:$0xff]   ;;  %120 = vmatprep.subr.bf16.mxu0 %v2202_v1  ;;  %v2205_v3 = vld [vmem:[#allocation4 + $0x14] ss:$8 sps:$4 sm:$0xff]   ;;  %v2207_v4 = vld [vmem:[#allocation4 + $0x10] ss:$8 sps:$4 sm:$0xff]  }
  0x4c   :  { %121 = vmatpush1.bf16.msra.mxu0 %v2204_v2  ;;  %v2209_v5 = vld [vmem:[#allocation6 + $0x4] ss:$8 sps:$4 sm:$0xff]   ;;  %v2211_v6 = vld [vmem:[#allocation6] ss:$8 sps:$4 sm:$0xff]   ;;  %v2212_v7 = vld [vmem:[#allocation6 + $0x14] ss:$8 sps:$4 sm:$0xff]  }
  0x4d   :  { %122 = vmatprep.subr.bf16.mxu0 %v2205_v3  ;;  %382 = vmatprep.subr.bf16.mxu1 %v2209_v5  ;;  %vm116_vm0 = vcmask 261120   ;;  %v2214_v9 = vld [vmem:[#allocation6 + $0x10] ss:$8 sps:$4 sm:$0xff]   ;;  %v2215_v10 = vld [vmem:[#allocation6 + $0x24] ss:$8 sps:$4 sm:$0xff]   ;;  %v82_v39 = vshrl.u32 %v81_v38, 7 }
  0x4e   :  { %383 = vmatpush1.bf16.msra.mxu1 %v2211_v6  ;;  %v2217_v11 = vld [vmem:[#allocation6 + $0x20] ss:$8 sps:$4 sm:$0xff]   ;;  %v2218_v12 = vld [vmem:[#allocation6 + $0x34] ss:$8 sps:$4 sm:$0xff]   ;;  %v2220_v13 = vld [vmem:[#allocation6 + $0x30] ss:$8 sps:$4 sm:$0xff]  }
  0x4f   :  { %384 = vmatprep.subr.bf16.mxu1 %v2212_v7  ;;  %v2221_v14 = vld [vmem:[#allocation6 + $0x44] ss:$8 sps:$4 sm:$0xff]   ;;  %v2223_v15 = vld [vmem:[#allocation6 + $0x40] ss:$8 sps:$4 sm:$0xff]   ;;  %v2224_v16 = vld [vmem:[#allocation6 + $0x54] ss:$8 sps:$4 sm:$0xff]  }
  0x50   :  { %123 = vmatpush1.bf16.msra.mxu0 %v2207_v4  ;;  %v2226_v17 = vld [vmem:[#allocation6 + $0x50] ss:$8 sps:$4 sm:$0xff]   ;;  %v2227_v18 = vld [vmem:[#allocation6 + $0x64] ss:$8 sps:$4 sm:$0xff]   ;;  %v2229_v19 = vld [vmem:[#allocation6 + $0x60] ss:$8 sps:$4 sm:$0xff]  }
  0x51   :  { %v2230_v20 = vld [vmem:[#allocation6 + $0x74] ss:$8 sps:$4 sm:$0xff]   ;;  %v2232_v21 = vld [vmem:[#allocation6 + $0x70] ss:$8 sps:$4 sm:$0xff]   ;;  %v2233_v22 = vld [vmem:[#allocation6 + $0x84] ss:$8 sps:$4 sm:$0xff]  }
  0x52   :  { %385 = vmatpush1.bf16.msra.mxu1 %v2214_v9  ;;  %v2235_v23 = vld [vmem:[#allocation6 + $0x80] ss:$8 sps:$4 sm:$0xff]   ;;  %v2236_v24 = vld [vmem:[#allocation6 + $0x94] ss:$8 sps:$4 sm:$0xff]   ;;  %v2238_v25 = vld [vmem:[#allocation6 + $0x90] ss:$8 sps:$4 sm:$0xff]  }
  0x53   :  { %1998 = vmatmul.mubr.msk.bf16.vlgmr.msra.gmra.mrb[0].mxu0 %vm116_vm0, %v2208_v8  ;;  %386 = vmatprep.subr.bf16.mxu1 %v2215_v10  ;;  %v2239_v26 = vld [vmem:[#allocation6 + $0xa4] ss:$8 sps:$4 sm:$0xff]   ;;  %v2241_v27 = vld [vmem:[#allocation6 + $0xa0] ss:$8 sps:$4 sm:$0xff]   ;;  %v2242_v28 = vld [vmem:[#allocation6 + $0xb4] ss:$8 sps:$4 sm:$0xff]  }
  0x54   :  { %v2244_v29 = vld [vmem:[#allocation6 + $0xb0] ss:$8 sps:$4 sm:$0xff]   ;;  %v2245_v30 = vld [vmem:[#allocation6 + $0xc4] ss:$8 sps:$4 sm:$0xff]   ;;  %v2247_v31 = vld [vmem:[#allocation6 + $0xc0] ss:$8 sps:$4 sm:$0xff]  }
  0x55   :  { %v2248_v32 = vld [vmem:[#allocation6 + $0xd4] ss:$8 sps:$4 sm:$0xff]   ;;  %v2250_v33 = vld [vmem:[#allocation6 + $0xd0] ss:$8 sps:$4 sm:$0xff]   ;;  %v2251_v34 = vld [vmem:[#allocation6 + $0xe4] ss:$8 sps:$4 sm:$0xff]  }
  0x56   :  { %387 = vmatpush1.bf16.msra.mxu1 %v2217_v11  ;;  %v2253_v35 = vld [vmem:[#allocation6 + $0xe0] ss:$8 sps:$4 sm:$0xff]   ;;  %v2254_v36 = vld [vmem:[#allocation6 + $0xf4] ss:$8 sps:$4 sm:$0xff]   ;;  %v2256_v37 = vld [vmem:[#allocation6 + $0xf0] ss:$8 sps:$4 sm:$0xff]  }
  0x57   :  { %388 = vmatprep.subr.bf16.mxu1 %v2218_v12  ;;  %v2704_v40 = vsub.s32 1, %v82_v39  ;;  %v79_v41 = vld [vmem:[#allocation7] ss:$8 sm:$0x3]  ;;  %v2706_v42 = vsub.s32 0, %v82_v39  ;;  %vm1983_vm1 = vcmask 7168  }
  0x58   :  { %v164_v55 = vld [vmem:[#allocation7 + $0x3] ss:$8 sm:$0x3]  ;;  %v2259_v9 = vld [vmem:[#allocation6 + $0x104] ss:$8 sps:$4 sm:$0xff]  }
  0x59   :  { %v88_v44 = vrot.slane %v79_v41, %v2704_v40  ;;  %v84_v45 = vrot.slane %v79_v41, %v2706_v42  ;;  %v215_v56 = vrot.slane %v164_v55, %v2706_v42  ;;  %v219_v57 = vrot.slane %v164_v55, %v2704_v40  ;;  %v2257_v8 = vld [vmem:[#allocation6 + $0x100] ss:$8 sps:$4 sm:$0xff]   ;;  %v2262_v10 = vld [vmem:[#allocation6 + $0x114] ss:$8 sps:$4 sm:$0xff]   ;;  %698 = vmatprep.subr.bf16.mxu0 %v2259_v9  ;;  %v2260_v11 = vld [vmem:[#allocation6 + $0x110] ss:$8 sps:$4 sm:$0xff]  }
  0x5a   :  { %389 = vmatpush1.bf16.msra.mxu1 %v2220_v13  ;;  %699 = vmatpush1.bf16.msra.mxu0 %v2257_v8  ;;  %v2265_v12 = vld [vmem:[#allocation6 + $0x124] ss:$8 sps:$4 sm:$0xff]   ;;  %v2263_v13 = vld [vmem:[#allocation6 + $0x120] ss:$8 sps:$4 sm:$0xff]   ;;  %v2286_v41 = vld [vmem:[#allocation6 + $0x194] ss:$8 sps:$4 sm:$0xff]  }
  0x5b   :  { %390 = vmatprep.subr.bf16.mxu1 %v2221_v14  ;;  %700 = vmatprep.subr.bf16.mxu0 %v2262_v10  ;;  %v2268_v14 = vld [vmem:[#allocation6 + $0x134] ss:$8 sps:$4 sm:$0xff]   ;;  %v2302_v55 = vld [vmem:[#allocation6 + $0x1f0] ss:$8 sps:$4 sm:$0xff]   ;;  %v2331_v8 = vld [vmem:[#allocation6 + $0x284] ss:$8 sps:$4 sm:$0xff]  }
  0x5c   :  { %v2329_v9 = vld [vmem:[#allocation6 + $0x280] ss:$8 sps:$4 sm:$0xff]   ;;  %v2334_v10 = vld [vmem:[#allocation6 + $0x294] ss:$8 sps:$4 sm:$0xff]  }
  0x5e   :  { %391 = vmatpush1.bf16.msra.mxu1 %v2223_v15  ;;  %701 = vmatpush1.bf16.msra.mxu0 %v2260_v11  ;;  %v2266_v15 = vld [vmem:[#allocation6 + $0x130] ss:$8 sps:$4 sm:$0xff]  }
  0x5f   :  { %392 = vmatprep.subr.bf16.mxu1 %v2224_v16  ;;  %702 = vmatprep.subr.bf16.mxu0 %v2265_v12  ;;  %v2271_v16 = vld [vmem:[#allocation6 + $0x144] ss:$8 sps:$4 sm:$0xff]   ;;  %v2332_v11 = vld [vmem:[#allocation6 + $0x290] ss:$8 sps:$4 sm:$0xff]  }
  0x60   :  { %v2337_v12 = vld [vmem:[#allocation6 + $0x2a4] ss:$8 sps:$4 sm:$0xff]  }
  0x62   :  { %393 = vmatpush1.bf16.msra.mxu1 %v2226_v17  ;;  %703 = vmatpush1.bf16.msra.mxu0 %v2263_v13  ;;  %v2269_v17 = vld [vmem:[#allocation6 + $0x140] ss:$8 sps:$4 sm:$0xff]  }
  0x63   :  { %394 = vmatprep.subr.bf16.mxu1 %v2227_v18  ;;  %704 = vmatprep.subr.bf16.mxu0 %v2268_v14  ;;  %v2274_v18 = vld [vmem:[#allocation6 + $0x154] ss:$8 sps:$4 sm:$0xff]   ;;  %v2335_v13 = vld [vmem:[#allocation6 + $0x2a0] ss:$8 sps:$4 sm:$0xff]  }
  0x64   :  { %v2340_v14 = vld [vmem:[#allocation6 + $0x2b4] ss:$8 sps:$4 sm:$0xff]  }
  0x66   :  { %395 = vmatpush1.bf16.msra.mxu1 %v2229_v19  ;;  %705 = vmatpush1.bf16.msra.mxu0 %v2266_v15  ;;  %v2272_v19 = vld [vmem:[#allocation6 + $0x150] ss:$8 sps:$4 sm:$0xff]  }
  0x67   :  { %396 = vmatprep.subr.bf16.mxu1 %v2230_v20  ;;  %706 = vmatprep.subr.bf16.mxu0 %v2271_v16  ;;  %v2277_v20 = vld [vmem:[#allocation6 + $0x164] ss:$8 sps:$4 sm:$0xff]   ;;  %v2338_v15 = vld [vmem:[#allocation6 + $0x2b0] ss:$8 sps:$4 sm:$0xff]  }
  0x68   :  { %v2343_v16 = vld [vmem:[#allocation6 + $0x2c4] ss:$8 sps:$4 sm:$0xff]  }
  0x6a   :  { %397 = vmatpush1.bf16.msra.mxu1 %v2232_v21  ;;  %707 = vmatpush1.bf16.msra.mxu0 %v2269_v17  ;;  %v2275_v21 = vld [vmem:[#allocation6 + $0x160] ss:$8 sps:$4 sm:$0xff]  }
  0x6b   :  { %398 = vmatprep.subr.bf16.mxu1 %v2233_v22  ;;  %708 = vmatprep.subr.bf16.mxu0 %v2274_v18  ;;  %v2280_v22 = vld [vmem:[#allocation6 + $0x174] ss:$8 sps:$4 sm:$0xff]   ;;  %v2341_v17 = vld [vmem:[#allocation6 + $0x2c0] ss:$8 sps:$4 sm:$0xff]  }
  0x6c   :  { %v2346_v18 = vld [vmem:[#allocation6 + $0x2d4] ss:$8 sps:$4 sm:$0xff]  }
  0x6e   :  { %399 = vmatpush1.bf16.msra.mxu1 %v2235_v23  ;;  %709 = vmatpush1.bf16.msra.mxu0 %v2272_v19  ;;  %v2278_v23 = vld [vmem:[#allocation6 + $0x170] ss:$8 sps:$4 sm:$0xff]  }
  0x6f   :  { %400 = vmatprep.subr.bf16.mxu1 %v2236_v24  ;;  %710 = vmatprep.subr.bf16.mxu0 %v2277_v20  ;;  %v2283_v24 = vld [vmem:[#allocation6 + $0x184] ss:$8 sps:$4 sm:$0xff]   ;;  %v2344_v19 = vld [vmem:[#allocation6 + $0x2d0] ss:$8 sps:$4 sm:$0xff]  }
  0x72   :  { %401 = vmatpush1.bf16.msra.mxu1 %v2238_v25  ;;  %711 = vmatpush1.bf16.msra.mxu0 %v2275_v21  ;;  %v2281_v25 = vld [vmem:[#allocation6 + $0x180] ss:$8 sps:$4 sm:$0xff]  }
  0x73   :  { %402 = vmatprep.subr.bf16.mxu1 %v2239_v26  ;;  %712 = vmatprep.subr.bf16.mxu0 %v2280_v22 }
  0x76   :  { %403 = vmatpush1.bf16.msra.mxu1 %v2241_v27  ;;  %713 = vmatpush1.bf16.msra.mxu0 %v2278_v23 }
  0x77   :  { %404 = vmatprep.subr.bf16.mxu1 %v2242_v28  ;;  %714 = vmatprep.subr.bf16.mxu0 %v2283_v24 }
  0x7a   :  { %405 = vmatpush1.bf16.msra.mxu1 %v2244_v29  ;;  %715 = vmatpush1.bf16.msra.mxu0 %v2281_v25 }
  0x7b   :  { %406 = vmatprep.subr.bf16.mxu1 %v2245_v30  ;;  %716 = vmatprep.subr.bf16.mxu0 %v2286_v41 }
  0x7e   :  { %407 = vmatpush1.bf16.msra.mxu1 %v2247_v31 }
  0x7f   :  { %408 = vmatprep.subr.bf16.mxu1 %v2248_v32 }
  0x82   :  { %409 = vmatpush1.bf16.msra.mxu1 %v2250_v33 }
  0x83   :  { %410 = vmatprep.subr.bf16.mxu1 %v2251_v34 }
  0x86   :  { %411 = vmatpush1.bf16.msra.mxu1 %v2253_v35 }
  0x87   :  { %412 = vmatprep.subr.bf16.mxu1 %v2254_v36 }
  0x8a   :  { %413 = vmatpush1.bf16.msra.mxu1 %v2256_v37 }
 0x126   :  { %v154_v43 = vpop.f32.mrb[0].mxu0 }
 0x127   :  { %v156_v46 = vpop.f32.mrb[1].mxu0  ;;  %v155_v52 = vadd.f32 %v154_v43, %v84_v45  ;;  %v2284_v43 = vld [vmem:[#allocation6 + $0x190] ss:$8 sps:$4 sm:$0xff]  }
 0x128   :  { %v158_v47 = vpop.f32.mrb[2].mxu0  ;;  %v157_v50 = vadd.f32 %v156_v46, %v88_v44  ;;  %717 = vmatpush1.bf16.msra.mxu0 %v2284_v43  ;;  %v2292_v46 = vld [vmem:[#allocation6 + $0x1b4] ss:$8 sps:$4 sm:$0xff]  }
 0x129   :  { %v159_v48 = vadd.f32 %v158_v47, %v84_v45  ;;  %v160_v49 = vpop.f32.mrb[3].mxu0  ;;  %v2287_v45 = vld [vmem:[#allocation6 + $0x1a0] ss:$8 sps:$4 sm:$0xff]   ;;  %v2290_v47 = vld [vmem:[#allocation6 + $0x1b0] ss:$8 sps:$4 sm:$0xff]  }
 0x12a   :  { %v161_v51 = vadd.f32 %v160_v49, %v88_v44  ;;  %v2289_v44 = vld [vmem:[#allocation6 + $0x1a4] ss:$8 sps:$4 sm:$0xff]   ;;  %v2293_v49 = vld [vmem:[#allocation6 + $0x1c0] ss:$8 sps:$4 sm:$0xff]  }
 0x12b   :  { %v177_v54 = vpack.c.bf16 %v159_v48, %v155_v52  ;;  %718 = vmatprep.subr.bf16.mxu0 %v2289_v44 }
 0x12c   :  { %v178_v53 = vpack.c.bf16 %v161_v51, %v157_v50  ;;  %719 = vmatpush1.bf16.msra.mxu0 %v2287_v45 }
 0x12d   :  { %720 = vmatprep.subr.bf16.mxu0 %v2292_v46 }
 0x12e   :  { %414 = vmatprep.mubr.bf16.mxu1 %v178_v53  ;;  %v2299_v53 = vld [vmem:[#allocation6 + $0x1e0] ss:$8 sps:$4 sm:$0xff]  }
 0x12f   :  { %415 = vmatmul.mubr.bf16.vlgmr.msra.gmra.mrb[0].mxu1 %v177_v54  ;;  %v2304_v54 = vld [vmem:[#allocation6 + $0x1f4] ss:$8 sps:$4 sm:$0xff]  }
 0x130   :  { %721 = vmatpush1.bf16.msra.mxu0 %v2290_v47 }
 0x202   :  { %v416_v58 = vpop.f32.mrb[0].mxu1 }
 0x203   :  { %v417_v59 = vadd.f32 %v416_v58, %v215_v56  ;;  %v418_v60 = vpop.f32.mrb[1].mxu1  ;;  %v2310_v58 = vld [vmem:[#allocation6 + $0x214] ss:$8 sps:$4 sm:$0xff]  }
 0x204   :  { %v419_v61 = vadd.f32 %v418_v60, %v219_v57  ;;  %v420_v62 = vpop.f32.mrb[2].mxu1  ;;  %v2313_v60 = vld [vmem:[#allocation6 + $0x224] ss:$8 sps:$4 sm:$0xff]  }
 0x205   :  { %v421_v63 = vadd.f32 %v420_v62, %v215_v56  ;;  %v422_v0 = vpop.f32.mrb[3].mxu1  ;;  %v425_v1 = vadd.f32 %v417_v59, %v155_v52  ;;  %v2301_v52 = vld [vmem:[#allocation6 + $0x1e4] ss:$8 sps:$4 sm:$0xff]   ;;  %v2305_v56 = vld [vmem:[#allocation6 + $0x200] ss:$8 sps:$4 sm:$0xff]  }
 0x206   :  { %v423_v2 = vadd.f32 %v422_v0, %v219_v57  ;;  %v426_v3 = vadd.f32 %v419_v61, %v157_v50  ;;  %v2298_v50 = vld [vmem:[#allocation6 + $0x1d4] ss:$8 sps:$4 sm:$0xff]   ;;  %v2307_v57 = vld [vmem:[#allocation6 + $0x204] ss:$8 sps:$4 sm:$0xff]   ;;  %v2308_v59 = vld [vmem:[#allocation6 + $0x210] ss:$8 sps:$4 sm:$0xff]  }
 0x207   :  { %v427_v4 = vadd.f32 %v421_v63, %v159_v48  ;;  %v2295_v48 = vld [vmem:[#allocation6 + $0x1c4] ss:$8 sps:$4 sm:$0xff]   ;;  %951 = vmatprep.subr.bf16.mxu1 %v2307_v57  ;;  %v2311_v61 = vld [vmem:[#allocation6 + $0x220] ss:$8 sps:$4 sm:$0xff]   ;;  %v2316_v62 = vld [vmem:[#allocation6 + $0x234] ss:$8 sps:$4 sm:$0xff]  }
 0x208   :  { %v428_v5 = vadd.f32 %v423_v2, %v161_v51  ;;  %v429_v6 = vadd.f32 %v426_v3, %v425_v1  ;;  %722 = vmatprep.subr.bf16.mxu0 %v2295_v48  ;;  %v2296_v51 = vld [vmem:[#allocation6 + $0x1d0] ss:$8 sps:$4 sm:$0xff]   ;;  %952 = vmatpush1.bf16.msra.mxu1 %v2305_v56  ;;  %v2319_v0 = vld [vmem:[#allocation6 + $0x244] ss:$8 sps:$4 sm:$0xff]   ;;  %v2322_v2 = vld [vmem:[#allocation6 + $0x254] ss:$8 sps:$4 sm:$0xff]  }
 0x209   :  { %723 = vmatpush1.bf16.msra.mxu0 %v2293_v49  ;;  %953 = vmatprep.subr.bf16.mxu1 %v2310_v58  ;;  %v2314_v63 = vld [vmem:[#allocation6 + $0x230] ss:$8 sps:$4 sm:$0xff]  }
 0x20a   :  { %430 = vadd.xlane.f32.xlu0 %v429_v6  ;;  %v432_v7 = vadd.f32 %v428_v5, %v427_v4  ;;  %724 = vmatprep.subr.bf16.mxu0 %v2298_v50  ;;  %v2328_v6 = vld [vmem:[#allocation6 + $0x274] ss:$8 sps:$4 sm:$0xff]  }
 0x20c   :  { %954 = vmatpush1.bf16.msra.mxu1 %v2308_v59 }
 0x20d   :  { %725 = vmatpush1.bf16.msra.mxu0 %v2296_v51  ;;  %955 = vmatprep.subr.bf16.mxu1 %v2313_v60 }
 0x20e   :  { %433 = vadd.xlane.f32.xlu0 %v432_v7  ;;  %726 = vmatprep.subr.bf16.mxu0 %v2301_v52  ;;  %v2326_v7 = vld [vmem:[#allocation6 + $0x270] ss:$8 sps:$4 sm:$0xff]   ;;  %v2349_v52 = vld [vmem:[#allocation6 + $0x2e4] ss:$8 sps:$4 sm:$0xff]  }
 0x210   :  { %956 = vmatpush1.bf16.msra.mxu1 %v2311_v61 }
 0x211   :  { %727 = vmatpush1.bf16.msra.mxu0 %v2299_v53  ;;  %957 = vmatprep.subr.bf16.mxu1 %v2316_v62  ;;  %v2347_v53 = vld [vmem:[#allocation6 + $0x2e0] ss:$8 sps:$4 sm:$0xff]  }
 0x212   :  { %728 = vmatprep.subr.bf16.mxu0 %v2304_v54  ;;  %v2352_v54 = vld [vmem:[#allocation6 + $0x2f4] ss:$8 sps:$4 sm:$0xff]  }
 0x214   :  { %958 = vmatpush1.bf16.msra.mxu1 %v2314_v63 }
 0x215   :  { %729 = vmatpush1.bf16.msra.mxu0 %v2302_v55  ;;  %959 = vmatprep.subr.bf16.mxu1 %v2319_v0 }
 0x297   :  { %v431_v26 = vpop.xlane.xlu0 %430 }
 0x298   :  { %v436_v27 = vmul.f32 0.00390625, %v431_v26  ;;  %v166_v26 = vld [vmem:[#allocation7 + $0x4] ss:$8 sm:$0x3] }
 0x29a   :  { %v2712_v28 = vsub.f32 %v425_v1, %v436_v27  ;;  %v2714_v29 = vsub.f32 %v426_v3, %v436_v27  ;;  %v2317_v1 = vld [vmem:[#allocation6 + $0x240] ss:$8 sps:$4 sm:$0xff]   ;;  %v2320_v3 = vld [vmem:[#allocation6 + $0x250] ss:$8 sps:$4 sm:$0xff]  }
 0x29b   :  { %v434_v30 = vpop.xlane.xlu0 %433  ;;  %960 = vmatpush1.bf16.msra.mxu1 %v2317_v1 }
 0x29c   :  { %v437_v31 = vmul.f32 0.00390625, %v434_v30  ;;  %v442_v32 = vmul.f32 %v2712_v28, %v2712_v28  ;;  %v443_v33 = vmul.f32 %v2714_v29, %v2714_v29  ;;  %961 = vmatprep.subr.bf16.mxu1 %v2322_v2 }
 0x29e   :  { %v2720_v34 = vsub.f32 %v427_v4, %v437_v31  ;;  %v2722_v35 = vsub.f32 %v428_v5, %v437_v31  ;;  %v446_v36 = vadd.f32 %v443_v33, %v442_v32  ;;  %v2325_v4 = vld [vmem:[#allocation6 + $0x264] ss:$8 sps:$4 sm:$0xff]   ;;  %v2323_v5 = vld [vmem:[#allocation6 + $0x260] ss:$8 sps:$4 sm:$0xff]   ;;  %v466_v33 = vrot.slane %v166_v26, %v2706_v42 }
 0x29f   :  { %962 = vmatpush1.bf16.msra.mxu1 %v2320_v3  ;;  %v168_v31 = vld [vmem:[#allocation7 + $0x5] ss:$8 sm:$0x3] }
 0x2a0   :  { %447 = vadd.xlane.f32.xlu1 %v446_v36  ;;  %v444_v37 = vmul.f32 %v2720_v34, %v2720_v34  ;;  %v445_v38 = vmul.f32 %v2722_v35, %v2722_v35  ;;  %963 = vmatprep.subr.bf16.mxu1 %v2325_v4  ;;  %v470_v36 = vrot.slane %v166_v26, %v2704_v40  ;;  %v2358_v26 = vld [vmem:[#allocation6 + $0x314] ss:$8 sps:$4 sm:$0xff]  }
 0x2a2   :  { %v449_v39 = vadd.f32 %v445_v38, %v444_v37  ;;  %v481_v38 = vrot.slane %v168_v31, %v2706_v42 }
 0x2a3   :  { %964 = vmatpush1.bf16.msra.mxu1 %v2323_v5 }
 0x2a4   :  { %450 = vadd.xlane.f32.xlu1 %v449_v39  ;;  %965 = vmatprep.subr.bf16.mxu1 %v2328_v6  ;;  %v485_v39 = vrot.slane %v168_v31, %v2704_v40  ;;  %v2359_v31 = vld [vmem:[#allocation6 + $0x320] ss:$8 sps:$4 sm:$0xff]  }
 0x2a7   :  { %966 = vmatpush1.bf16.msra.mxu1 %v2326_v7  ;;  %v172_v7 = vld [vmem:[#allocation7 + $0x7] ss:$8 sm:$0x3] }
 0x2a8   :  { %967 = vmatprep.subr.bf16.mxu1 %v2331_v8  ;;  %v784_v8 = vrot.slane %v172_v7, %v2706_v42 }
 0x2ab   :  { %968 = vmatpush1.bf16.msra.mxu1 %v2329_v9  ;;  %v788_v9 = vrot.slane %v172_v7, %v2704_v40  ;;  %v2398_v7 = vld [vmem:[#allocation6 + $0x3f0] ss:$8 sps:$4 sm:$0xff]  }
 0x2ac   :  { %969 = vmatprep.subr.bf16.mxu1 %v2334_v10 }
 0x2af   :  { %970 = vmatpush1.bf16.msra.mxu1 %v2332_v11 }
 0x2b0   :  { %971 = vmatprep.subr.bf16.mxu1 %v2337_v12 }
 0x2b3   :  { %972 = vmatpush1.bf16.msra.mxu1 %v2335_v13 }
 0x2b4   :  { %973 = vmatprep.subr.bf16.mxu1 %v2340_v14 }
 0x2b7   :  { %974 = vmatpush1.bf16.msra.mxu1 %v2338_v15 }
 0x2b8   :  { %975 = vmatprep.subr.bf16.mxu1 %v2343_v16 }
 0x2bb   :  { %976 = vmatpush1.bf16.msra.mxu1 %v2341_v17 }
 0x2bc   :  { %977 = vmatprep.subr.bf16.mxu1 %v2346_v18 }
 0x2bf   :  { %978 = vmatpush1.bf16.msra.mxu1 %v2344_v19 }
 0x2c0   :  { %979 = vmatprep.subr.bf16.mxu1 %v2349_v52 }
 0x2c3   :  { %980 = vmatpush1.bf16.msra.mxu1 %v2347_v53 }
 0x2c4   :  { %981 = vmatprep.subr.bf16.mxu1 %v2352_v54 }
 0x32d   :  { %v448_v20 = vpop.xlane.xlu1 %447 }
 0x32e   :  { %v452_v21 = vmul.f32 0.00390625, %v448_v20 }
 0x330   :  { %v454_v22 = vadd.f32 1e-05, %v452_v21 }
 0x331   :  { %v451_v23 = vpop.xlane.xlu1 %450 }
 0x332   :  { %2497 = vrsqrt.f32 %v454_v22  ;;  %v453_v24 = vmul.f32 0.00390625, %v451_v23 }
 0x334   :  { %v455_v25 = vadd.f32 1e-05, %v453_v24  ;;  %v2353_v24 = vld [vmem:[#allocation6 + $0x300] ss:$8 sps:$4 sm:$0xff]  }
 0x336   :  { %2499 = vrsqrt.f32 %v455_v25  ;;  %v2355_v25 = vld [vmem:[#allocation6 + $0x304] ss:$8 sps:$4 sm:$0xff]  }
 0x337   :  { %1280 = vmatprep.subr.bf16.mxu0 %v2355_v25 }
 0x33c   :  { %v2498_v27 = vpop.eup %2497 }
 0x33d   :  { %v458_v30 = vmul.f32 %v2498_v27, %v2712_v28  ;;  %v459_v32 = vmul.f32 %v2498_v27, %v2714_v29  ;;  %v2356_v27 = vld [vmem:[#allocation6 + $0x310] ss:$8 sps:$4 sm:$0xff]  }
 0x33f   :  { %v474_v44 = vmul.f32 %v470_v36, %v459_v32  ;;  %v473_v45 = vmul.f32 %v466_v33, %v458_v30  ;;  %v2361_v30 = vld [vmem:[#allocation6 + $0x324] ss:$8 sps:$4 sm:$0xff]   ;;  %v2364_v32 = vld [vmem:[#allocation6 + $0x334] ss:$8 sps:$4 sm:$0xff]  }
 0x340   :  { %v2500_v37 = vpop.eup %2499 }
 0x341   :  { %v460_v41 = vmul.f32 %v2500_v37, %v2720_v34  ;;  %v461_v43 = vmul.f32 %v2500_v37, %v2722_v35  ;;  %v489_v47 = vadd.f32 %v485_v39, %v474_v44  ;;  %v488_v29 = vadd.f32 %v481_v38, %v473_v45  ;;  %v2350_v34 = vld [vmem:[#allocation6 + $0x2f0] ss:$8 sps:$4 sm:$0xff]   ;;  %v170_v35 = vld [vmem:[#allocation7 + $0x6] ss:$8 sm:$0x3] }
 0x342   :  { %982 = vmatpush1.bf16.msra.mxu1 %v2350_v34  ;;  %v531_v55 = vrot.slane %v170_v35, %v2706_v42  ;;  %v535_v56 = vrot.slane %v170_v35, %v2704_v40  ;;  %v2365_v37 = vld [vmem:[#allocation6 + $0x340] ss:$8 sps:$4 sm:$0xff]   ;;  %v2376_v44 = vld [vmem:[#allocation6 + $0x374] ss:$8 sps:$4 sm:$0xff]   ;;  %v2374_v45 = vld [vmem:[#allocation6 + $0x370] ss:$8 sps:$4 sm:$0xff]  }
 0x343   :  { %v476_v46 = vmul.f32 %v470_v36, %v461_v43  ;;  %v475_v28 = vmul.f32 %v466_v33, %v460_v41  ;;  %v2362_v33 = vld [vmem:[#allocation6 + $0x330] ss:$8 sps:$4 sm:$0xff]   ;;  %v2367_v36 = vld [vmem:[#allocation6 + $0x344] ss:$8 sps:$4 sm:$0xff]   ;;  %v2371_v43 = vld [vmem:[#allocation6 + $0x360] ss:$8 sps:$4 sm:$0xff]  }
 0x344   :  { %v2373_v41 = vld [vmem:[#allocation6 + $0x364] ss:$8 sps:$4 sm:$0xff]  }
 0x345   :  { %v491_v48 = vadd.f32 %v485_v39, %v476_v46  ;;  %v490_v49 = vadd.f32 %v481_v38, %v475_v28  ;;  %v2370_v38 = vld [vmem:[#allocation6 + $0x354] ss:$8 sps:$4 sm:$0xff]   ;;  %v2368_v39 = vld [vmem:[#allocation6 + $0x350] ss:$8 sps:$4 sm:$0xff]   ;;  %v2379_v46 = vld [vmem:[#allocation6 + $0x384] ss:$8 sps:$4 sm:$0xff]  }
 0x346   :  { %v2377_v28 = vld [vmem:[#allocation6 + $0x380] ss:$8 sps:$4 sm:$0xff]  }
 0x347   :  { %v493_v50 = vpack.c.bf16 %v491_v48, %v489_v47  ;;  %v492_v51 = vpack.c.bf16 %v490_v49, %v488_v29 }
 0x349   :  { %730 = vmatprep.mubr.bf16.mxu0 %v493_v50 }
 0x34a   :  { %731 = vmatmul.mubr.bf16.vlgmr.msra.gmra.mrb[4].mxu0 %v492_v51 }
 0x34b   :  { %1281 = vmatpush1.bf16.msra.mxu0 %v2353_v24 }
 0x34c   :  { %1282 = vmatprep.subr.bf16.mxu0 %v2358_v26 }
 0x34f   :  { %1283 = vmatpush1.bf16.msra.mxu0 %v2356_v27 }
 0x350   :  { %1284 = vmatprep.subr.bf16.mxu0 %v2361_v30 }
 0x353   :  { %1285 = vmatpush1.bf16.msra.mxu0 %v2359_v31 }
 0x354   :  { %1286 = vmatprep.subr.bf16.mxu0 %v2364_v32 }
 0x357   :  { %1287 = vmatpush1.bf16.msra.mxu0 %v2362_v33 }
 0x358   :  { %1288 = vmatprep.subr.bf16.mxu0 %v2367_v36 }
 0x35b   :  { %1289 = vmatpush1.bf16.msra.mxu0 %v2365_v37 }
 0x35c   :  { %1290 = vmatprep.subr.bf16.mxu0 %v2370_v38 }
 0x35f   :  { %1291 = vmatpush1.bf16.msra.mxu0 %v2368_v39 }
 0x360   :  { %1292 = vmatprep.subr.bf16.mxu0 %v2373_v41  ;;  %v1061_v41 = vld [vmem:[#allocation7 + $0x12] ss:$8 sm:$0x3] }
 0x363   :  { %1293 = vmatpush1.bf16.msra.mxu0 %v2371_v43  ;;  %v1113_v43 = vrot.slane %v1061_v41, %v2706_v42 }
 0x364   :  { %1294 = vmatprep.subr.bf16.mxu0 %v2376_v44  ;;  %v1117_v44 = vrot.slane %v1061_v41, %v2704_v40  ;;  %v2446_v41 = vld [vmem:[#allocation6 + $0x4f0] ss:$8 sps:$4 sm:$0xff]  }
 0x367   :  { %1295 = vmatpush1.bf16.msra.mxu0 %v2374_v45 }
 0x368   :  { %1296 = vmatprep.subr.bf16.mxu0 %v2379_v46 }
 0x36b   :  { %1297 = vmatpush1.bf16.msra.mxu0 %v2377_v28 }
 0x41d   :  { %v732_v57 = vpop.f32.mrb[4].mxu0 }
 0x41e   :  { %v733_v58 = vadd.f32 %v732_v57, %v531_v55  ;;  %v734_v59 = vpop.f32.mrb[5].mxu0 }
 0x41f   :  { %v735_v60 = vadd.f32 %v734_v59, %v535_v56  ;;  %v736_v61 = vpop.f32.mrb[6].mxu0 }
 0x420   :  { %v737_v62 = vadd.f32 %v736_v61, %v531_v55  ;;  %v738_v63 = vpop.f32.mrb[7].mxu0  ;;  %v741_v1 = vmax.f32 %v733_v58, 0.0  ;;  %v2383_v61 = vld [vmem:[#allocation6 + $0x3a0] ss:$8 sps:$4 sm:$0xff]  }
 0x421   :  { %v739_v0 = vadd.f32 %v738_v63, %v535_v56  ;;  %v742_v3 = vmax.f32 %v735_v60, 0.0  ;;  %v2385_v60 = vld [vmem:[#allocation6 + $0x3a4] ss:$8 sps:$4 sm:$0xff]   ;;  %v2386_v63 = vld [vmem:[#allocation6 + $0x3b0] ss:$8 sps:$4 sm:$0xff]  }
 0x422   :  { %v743_v2 = vmax.f32 %v737_v62, 0.0  ;;  %v2388_v62 = vld [vmem:[#allocation6 + $0x3b4] ss:$8 sps:$4 sm:$0xff]  }
 0x423   :  { %v744_v4 = vmax.f32 %v739_v0, 0.0  ;;  %v2391_v0 = vld [vmem:[#allocation6 + $0x3c4] ss:$8 sps:$4 sm:$0xff]  }
 0x424   :  { %v745_v5 = vpack.c.bf16 %v743_v2, %v741_v1  ;;  %v2389_v1 = vld [vmem:[#allocation6 + $0x3c0] ss:$8 sps:$4 sm:$0xff]   ;;  %v2394_v2 = vld [vmem:[#allocation6 + $0x3d4] ss:$8 sps:$4 sm:$0xff]  }
 0x425   :  { %v746_v6 = vpack.c.bf16 %v744_v4, %v742_v3  ;;  %v2392_v3 = vld [vmem:[#allocation6 + $0x3d0] ss:$8 sps:$4 sm:$0xff]   ;;  %v2397_v4 = vld [vmem:[#allocation6 + $0x3e4] ss:$8 sps:$4 sm:$0xff]  }
 0x427   :  { %983 = vmatprep.mubr.bf16.mxu1 %v746_v6  ;;  %v2400_v6 = vld [vmem:[#allocation6 + $0x3f4] ss:$8 sps:$4 sm:$0xff]  }
 0x428   :  { %984 = vmatmul.mubr.bf16.vlgmr.msra.gmra.mrb[4].mxu1 %v745_v5  ;;  %v2395_v5 = vld [vmem:[#allocation6 + $0x3e0] ss:$8 sps:$4 sm:$0xff]  }
 0x4fb   :  { %v985_v10 = vpop.f32.mrb[4].mxu1 }
 0x4fc   :  { %v986_v11 = vadd.f32 %v985_v10, %v784_v8  ;;  %v987_v12 = vpop.f32.mrb[5].mxu1 }
 0x4fd   :  { %v988_v13 = vadd.f32 %v987_v12, %v788_v9  ;;  %v989_v14 = vpop.f32.mrb[6].mxu1 }
 0x4fe   :  { %v994_v15 = vadd.f32 %v986_v11, %v488_v29  ;;  %v990_v16 = vadd.f32 %v989_v14, %v784_v8  ;;  %v991_v17 = vpop.f32.mrb[7].mxu1  ;;  %v174_v14 = vld [vmem:[#allocation7 + $0x10] ss:$8 sm:$0x3] }
 0x4ff   :  { %v995_v18 = vadd.f32 %v988_v13, %v489_v47  ;;  %v992_v19 = vadd.f32 %v991_v17, %v788_v9  ;;  %v2382_v47 = vld [vmem:[#allocation6 + $0x394] ss:$8 sps:$4 sm:$0xff]   ;;  %v1038_v17 = vrot.slane %v174_v14, %v2704_v40 }
 0x500   :  { %v996_v20 = vadd.f32 %v990_v16, %v490_v49  ;;  %1298 = vmatprep.subr.bf16.mxu0 %v2382_v47  ;;  %v1034_v16 = vrot.slane %v174_v14, %v2706_v42 }
 0x501   :  { %v997_v21 = vadd.f32 %v992_v19, %v491_v48  ;;  %v998_v22 = vadd.f32 %v995_v18, %v994_v15  ;;  %v2380_v48 = vld [vmem:[#allocation6 + $0x390] ss:$8 sps:$4 sm:$0xff]  }
 0x502   :  { %1299 = vmatpush1.bf16.msra.mxu0 %v2380_v48 }
 0x503   :  { %999 = vadd.xlane.f32.xlu0 %v998_v22  ;;  %v1001_v23 = vadd.f32 %v997_v21, %v996_v20  ;;  %1300 = vmatprep.subr.bf16.mxu0 %v2385_v60  ;;  %v2407_v60 = vld [vmem:[#allocation6 + $0x420] ss:$8 sps:$4 sm:$0xff]  }
 0x505   :  { %1002 = vadd.xlane.f32.xlu1 %v1001_v23 }
 0x506   :  { %1301 = vmatpush1.bf16.msra.mxu0 %v2383_v61  ;;  %v2412_v61 = vld [vmem:[#allocation6 + $0x434] ss:$8 sps:$4 sm:$0xff]  }
 0x507   :  { %1302 = vmatprep.subr.bf16.mxu0 %v2388_v62  ;;  %v2410_v62 = vld [vmem:[#allocation6 + $0x430] ss:$8 sps:$4 sm:$0xff]  }
 0x50a   :  { %1303 = vmatpush1.bf16.msra.mxu0 %v2386_v63  ;;  %v2415_v63 = vld [vmem:[#allocation6 + $0x444] ss:$8 sps:$4 sm:$0xff]  }
 0x50b   :  { %1304 = vmatprep.subr.bf16.mxu0 %v2391_v0  ;;  %v2413_v0 = vld [vmem:[#allocation6 + $0x440] ss:$8 sps:$4 sm:$0xff]  }
 0x50e   :  { %1305 = vmatpush1.bf16.msra.mxu0 %v2389_v1  ;;  %v2418_v1 = vld [vmem:[#allocation6 + $0x454] ss:$8 sps:$4 sm:$0xff]  }
 0x50f   :  { %1306 = vmatprep.subr.bf16.mxu0 %v2394_v2  ;;  %v2416_v2 = vld [vmem:[#allocation6 + $0x450] ss:$8 sps:$4 sm:$0xff]  }
 0x512   :  { %1307 = vmatpush1.bf16.msra.mxu0 %v2392_v3  ;;  %v2421_v3 = vld [vmem:[#allocation6 + $0x464] ss:$8 sps:$4 sm:$0xff]  }
 0x513   :  { %1308 = vmatprep.subr.bf16.mxu0 %v2397_v4  ;;  %v2419_v4 = vld [vmem:[#allocation6 + $0x460] ss:$8 sps:$4 sm:$0xff]  }
 0x516   :  { %1309 = vmatpush1.bf16.msra.mxu0 %v2395_v5  ;;  %v2424_v5 = vld [vmem:[#allocation6 + $0x474] ss:$8 sps:$4 sm:$0xff]  }
 0x517   :  { %1310 = vmatprep.subr.bf16.mxu0 %v2400_v6  ;;  %v2422_v6 = vld [vmem:[#allocation6 + $0x470] ss:$8 sps:$4 sm:$0xff]  }
 0x51a   :  { %1311 = vmatpush1.bf16.msra.mxu0 %v2398_v7  ;;  %v2427_v7 = vld [vmem:[#allocation6 + $0x484] ss:$8 sps:$4 sm:$0xff]  }
 0x590   :  { %v1000_v29 = vpop.xlane.xlu0 %999 }
 0x591   :  { %v1004_v49 = vmul.f32 0.00390625, %v1000_v29 }
 0x592   :  { %v1003_v50 = vpop.xlane.xlu1 %1002 }
 0x593   :  { %v1006_v51 = vsub.f32 %v994_v15, %v1004_v49  ;;  %v1007_v52 = vsub.f32 %v995_v18, %v1004_v49  ;;  %v1005_v53 = vmul.f32 0.00390625, %v1003_v50  ;;  %v176_v15 = vld [vmem:[#allocation7 + $0x11] ss:$8 sm:$0x3] }
 0x594   :  { %v1049_v22 = vrot.slane %v176_v15, %v2706_v42  ;;  %v1053_v23 = vrot.slane %v176_v15, %v2704_v40 }
 0x595   :  { %v1008_v54 = vsub.f32 %v996_v20, %v1005_v53  ;;  %v1009_v34 = vsub.f32 %v997_v21, %v1005_v53  ;;  %v1010_v35 = vmul.f32 %v1006_v51, %v1006_v51  ;;  %v1011_v55 = vmul.f32 %v1007_v52, %v1007_v52 }
 0x597   :  { %v1014_v56 = vadd.f32 %v1011_v55, %v1010_v35  ;;  %v1012_v57 = vmul.f32 %v1008_v54, %v1008_v54  ;;  %v1013_v58 = vmul.f32 %v1009_v34, %v1009_v34  ;;  %v2401_v55 = vld [vmem:[#allocation6 + $0x400] ss:$8 sps:$4 sm:$0xff]  }
 0x599   :  { %1015 = vadd.xlane.f32.xlu0 %v1014_v56  ;;  %v1017_v59 = vadd.f32 %v1013_v58, %v1012_v57  ;;  %v2403_v56 = vld [vmem:[#allocation6 + $0x404] ss:$8 sps:$4 sm:$0xff]   ;;  %v2406_v57 = vld [vmem:[#allocation6 + $0x414] ss:$8 sps:$4 sm:$0xff]   ;;  %v2404_v58 = vld [vmem:[#allocation6 + $0x410] ss:$8 sps:$4 sm:$0xff]  }
 0x59a   :  { %1595 = vmatprep.subr.bf16.mxu1 %v2403_v56  ;;  %v2473_v56 = vld [vmem:[#allocation6 + $0x580] ss:$8 sps:$4 sm:$0xff]  }
 0x59b   :  { %1018 = vadd.xlane.f32.xlu1 %v1017_v59  ;;  %1596 = vmatpush1.bf16.msra.mxu1 %v2401_v55  ;;  %v2409_v59 = vld [vmem:[#allocation6 + $0x424] ss:$8 sps:$4 sm:$0xff]  }
 0x59c   :  { %1597 = vmatprep.subr.bf16.mxu1 %v2406_v57  ;;  %v2475_v55 = vld [vmem:[#allocation6 + $0x584] ss:$8 sps:$4 sm:$0xff]   ;;  %v2478_v57 = vld [vmem:[#allocation6 + $0x594] ss:$8 sps:$4 sm:$0xff]  }
 0x59f   :  { %1598 = vmatpush1.bf16.msra.mxu1 %v2404_v58  ;;  %v2476_v58 = vld [vmem:[#allocation6 + $0x590] ss:$8 sps:$4 sm:$0xff]  }
 0x5a0   :  { %1599 = vmatprep.subr.bf16.mxu1 %v2409_v59  ;;  %v2481_v59 = vld [vmem:[#allocation6 + $0x5a4] ss:$8 sps:$4 sm:$0xff]  }
 0x5a3   :  { %1600 = vmatpush1.bf16.msra.mxu1 %v2407_v60  ;;  %v2479_v60 = vld [vmem:[#allocation6 + $0x5a0] ss:$8 sps:$4 sm:$0xff]  }
 0x5a4   :  { %1601 = vmatprep.subr.bf16.mxu1 %v2412_v61  ;;  %v2484_v61 = vld [vmem:[#allocation6 + $0x5b4] ss:$8 sps:$4 sm:$0xff]  }
 0x5a7   :  { %1602 = vmatpush1.bf16.msra.mxu1 %v2410_v62  ;;  %v2482_v62 = vld [vmem:[#allocation6 + $0x5b0] ss:$8 sps:$4 sm:$0xff]  }
 0x5a8   :  { %1603 = vmatprep.subr.bf16.mxu1 %v2415_v63  ;;  %v2487_v63 = vld [vmem:[#allocation6 + $0x5c4] ss:$8 sps:$4 sm:$0xff]  }
 0x5ab   :  { %1604 = vmatpush1.bf16.msra.mxu1 %v2413_v0  ;;  %v2485_v0 = vld [vmem:[#allocation6 + $0x5c0] ss:$8 sps:$4 sm:$0xff]  }
 0x5ac   :  { %1605 = vmatprep.subr.bf16.mxu1 %v2418_v1  ;;  %v2490_v1 = vld [vmem:[#allocation6 + $0x5d4] ss:$8 sps:$4 sm:$0xff]  }
 0x5af   :  { %1606 = vmatpush1.bf16.msra.mxu1 %v2416_v2  ;;  %v2488_v2 = vld [vmem:[#allocation6 + $0x5d0] ss:$8 sps:$4 sm:$0xff]  }
 0x5b0   :  { %1607 = vmatprep.subr.bf16.mxu1 %v2421_v3 }
 0x5b3   :  { %1608 = vmatpush1.bf16.msra.mxu1 %v2419_v4 }
 0x5b4   :  { %1609 = vmatprep.subr.bf16.mxu1 %v2424_v5 }
 0x5b7   :  { %1610 = vmatpush1.bf16.msra.mxu1 %v2422_v6 }
 0x5b8   :  { %1611 = vmatprep.subr.bf16.mxu1 %v2427_v7 }
 0x626   :  { %v1016_v8 = vpop.xlane.xlu0 %1015 }
 0x627   :  { %v1020_v9 = vmul.f32 0.00390625, %v1016_v8  ;;  %v2425_v8 = vld [vmem:[#allocation6 + $0x480] ss:$8 sps:$4 sm:$0xff]  }
 0x628   :  { %v1019_v10 = vpop.xlane.xlu1 %1018  ;;  %1612 = vmatpush1.bf16.msra.mxu1 %v2425_v8 }
 0x629   :  { %v1022_v11 = vadd.f32 1e-05, %v1020_v9  ;;  %v1021_v12 = vmul.f32 0.00390625, %v1019_v10  ;;  %v2430_v9 = vld [vmem:[#allocation6 + $0x494] ss:$8 sps:$4 sm:$0xff]  }
 0x62a   :  { %v2428_v10 = vld [vmem:[#allocation6 + $0x490] ss:$8 sps:$4 sm:$0xff]   ;;  %1613 = vmatprep.subr.bf16.mxu1 %v2430_v9 }
 0x62b   :  { %2501 = vrsqrt.f32 %v1022_v11  ;;  %v1023_v13 = vadd.f32 1e-05, %v1021_v12  ;;  %v1063_v9 = vld [vmem:[#allocation7 + $0x13] ss:$8 sm:$0x3] }
 0x62c   :  { %1614 = vmatpush1.bf16.msra.mxu1 %v2428_v10  ;;  %v1065_v10 = vld [vmem:[#allocation7 + $0x14] ss:$8 sm:$0x3] }
 0x62d   :  { %2503 = vrsqrt.f32 %v1023_v13 }
 0x635   :  { %v2502_v18 = vpop.eup %2501 }
 0x636   :  { %v1026_v19 = vmul.f32 %v2502_v18, %v1006_v51  ;;  %v1027_v20 = vmul.f32 %v2502_v18, %v1007_v52 }
 0x637   :  { %v2504_v21 = vpop.eup %2503 }
 0x638   :  { %v1028_v24 = vmul.f32 %v2504_v21, %v1008_v54  ;;  %v1029_v25 = vmul.f32 %v2504_v21, %v1009_v34  ;;  %v1042_v26 = vmul.f32 %v1038_v17, %v1027_v20  ;;  %v1041_v27 = vmul.f32 %v1034_v16, %v1026_v19 }
 0x63a   :  { %v1044_v30 = vmul.f32 %v1038_v17, %v1029_v25  ;;  %v1043_v31 = vmul.f32 %v1034_v16, %v1028_v24  ;;  %v1057_v32 = vadd.f32 %v1053_v23, %v1042_v26  ;;  %v1056_v36 = vadd.f32 %v1049_v22, %v1041_v27  ;;  %v2433_v25 = vld [vmem:[#allocation6 + $0x4a4] ss:$8 sps:$4 sm:$0xff]   ;;  %v2431_v26 = vld [vmem:[#allocation6 + $0x4a0] ss:$8 sps:$4 sm:$0xff]   ;;  %v2436_v27 = vld [vmem:[#allocation6 + $0x4b4] ss:$8 sps:$4 sm:$0xff]  }
 0x63b   :  { %1615 = vmatprep.subr.bf16.mxu1 %v2433_v25 }
 0x63c   :  { %v1059_v33 = vadd.f32 %v1053_v23, %v1044_v30  ;;  %v1058_v37 = vadd.f32 %v1049_v22, %v1043_v31  ;;  %1616 = vmatpush1.bf16.msra.mxu1 %v2431_v26  ;;  %v2434_v30 = vld [vmem:[#allocation6 + $0x4b0] ss:$8 sps:$4 sm:$0xff]   ;;  %v2439_v31 = vld [vmem:[#allocation6 + $0x4c4] ss:$8 sps:$4 sm:$0xff]  }
 0x63d   :  { %1617 = vmatprep.subr.bf16.mxu1 %v2436_v27 }
 0x63e   :  { %v1075_v38 = vpack.c.bf16 %v1059_v33, %v1057_v32  ;;  %v1074_v39 = vpack.c.bf16 %v1058_v37, %v1056_v36 }
 0x640   :  { %1312 = vmatprep.mubr.bf16.mxu0 %v1075_v38  ;;  %1618 = vmatpush1.bf16.msra.mxu1 %v2434_v30  ;;  %v2443_v38 = vld [vmem:[#allocation6 + $0x4e0] ss:$8 sps:$4 sm:$0xff]  }
 0x641   :  { %1313 = vmatmul.mubr.bf16.vlgmr.msra.gmra.mrb[8].mxu0 %v1074_v39  ;;  %1619 = vmatprep.subr.bf16.mxu1 %v2439_v31  ;;  %v2448_v39 = vld [vmem:[#allocation6 + $0x4f4] ss:$8 sps:$4 sm:$0xff]  }
 0x714   :  { %v1314_v45 = vpop.f32.mrb[8].mxu0 }
 0x715   :  { %v1315_v46 = vadd.f32 %v1314_v45, %v1113_v43  ;;  %v1316_v28 = vpop.f32.mrb[9].mxu0  ;;  %v2454_v45 = vld [vmem:[#allocation6 + $0x514] ss:$8 sps:$4 sm:$0xff]  }
 0x716   :  { %v1317_v47 = vadd.f32 %v1316_v28, %v1117_v44  ;;  %v1318_v48 = vpop.f32.mrb[10].mxu0  ;;  %v2457_v28 = vld [vmem:[#allocation6 + $0x524] ss:$8 sps:$4 sm:$0xff]  }
 0x717   :  { %v1323_v29 = vadd.f32 %v1315_v46, %v1056_v36  ;;  %v1319_v49 = vadd.f32 %v1318_v48, %v1113_v43  ;;  %v1320_v50 = vpop.f32.mrb[11].mxu0  ;;  %v2440_v36 = vld [vmem:[#allocation6 + $0x4d0] ss:$8 sps:$4 sm:$0xff]   ;;  %v2449_v43 = vld [vmem:[#allocation6 + $0x500] ss:$8 sps:$4 sm:$0xff]  }
 0x718   :  { %v1324_v51 = vadd.f32 %v1317_v47, %v1057_v32  ;;  %v1321_v52 = vadd.f32 %v1320_v50, %v1117_v44  ;;  %v2437_v32 = vld [vmem:[#allocation6 + $0x4c0] ss:$8 sps:$4 sm:$0xff]   ;;  %v2451_v44 = vld [vmem:[#allocation6 + $0x504] ss:$8 sps:$4 sm:$0xff]   ;;  %v2452_v46 = vld [vmem:[#allocation6 + $0x510] ss:$8 sps:$4 sm:$0xff]  }
 0x719   :  { %v1325_v53 = vadd.f32 %v1319_v49, %v1058_v37  ;;  %1620 = vmatpush1.bf16.msra.mxu1 %v2437_v32  ;;  %v2445_v37 = vld [vmem:[#allocation6 + $0x4e4] ss:$8 sps:$4 sm:$0xff]   ;;  %1848 = vmatprep.subr.bf16.mxu0 %v2451_v44  ;;  %v2455_v47 = vld [vmem:[#allocation6 + $0x520] ss:$8 sps:$4 sm:$0xff]   ;;  %v2460_v48 = vld [vmem:[#allocation6 + $0x534] ss:$8 sps:$4 sm:$0xff]  }
 0x71a   :  { %v1326_v54 = vadd.f32 %v1321_v52, %v1059_v33  ;;  %v1327_v34 = vadd.f32 %v1324_v51, %v1323_v29  ;;  %v2442_v33 = vld [vmem:[#allocation6 + $0x4d4] ss:$8 sps:$4 sm:$0xff]   ;;  %1849 = vmatpush1.bf16.msra.mxu0 %v2449_v43  ;;  %v2463_v49 = vld [vmem:[#allocation6 + $0x544] ss:$8 sps:$4 sm:$0xff]   ;;  %v2461_v50 = vld [vmem:[#allocation6 + $0x540] ss:$8 sps:$4 sm:$0xff]  }
 0x71b   :  { %1621 = vmatprep.subr.bf16.mxu1 %v2442_v33  ;;  %1850 = vmatprep.subr.bf16.mxu0 %v2454_v45  ;;  %v2464_v52 = vld [vmem:[#allocation6 + $0x550] ss:$8 sps:$4 sm:$0xff]  }
 0x71c   :  { %1328 = vadd.xlane.f32.xlu0 %v1327_v34  ;;  %v1330_v35 = vadd.f32 %v1326_v54, %v1325_v53  ;;  %v2472_v34 = vld [vmem:[#allocation6 + $0x574] ss:$8 sps:$4 sm:$0xff]  }
 0x71d   :  { %1622 = vmatpush1.bf16.msra.mxu1 %v2440_v36 }
 0x71e   :  { %1331 = vadd.xlane.f32.xlu1 %v1330_v35  ;;  %1623 = vmatprep.subr.bf16.mxu1 %v2445_v37  ;;  %v2470_v35 = vld [vmem:[#allocation6 + $0x570] ss:$8 sps:$4 sm:$0xff]  }
 0x71f   :  { %1851 = vmatpush1.bf16.msra.mxu0 %v2452_v46 }
 0x720   :  { %1852 = vmatprep.subr.bf16.mxu0 %v2457_v28 }
 0x721   :  { %1624 = vmatpush1.bf16.msra.mxu1 %v2443_v38  ;;  %v2491_v38 = vld [vmem:[#allocation6 + $0x5e0] ss:$8 sps:$4 sm:$0xff]  }
 0x722   :  { %1625 = vmatprep.subr.bf16.mxu1 %v2448_v39  ;;  %v2496_v39 = vld [vmem:[#allocation6 + $0x5f4] ss:$8 sps:$4 sm:$0xff]  }
 0x723   :  { %1853 = vmatpush1.bf16.msra.mxu0 %v2455_v47 }
 0x724   :  { %1854 = vmatprep.subr.bf16.mxu0 %v2460_v48 }
 0x725   :  { %1626 = vmatpush1.bf16.msra.mxu1 %v2446_v41 }
 0x7a9   :  { %v1329_v11 = vpop.xlane.xlu0 %1328 }
 0x7aa   :  { %v1333_v12 = vmul.f32 0.00390625, %v1329_v11  ;;  %v1363_v11 = vrot.slane %v1063_v9, %v2706_v42 }
 0x7ab   :  { %v1332_v13 = vpop.xlane.xlu1 %1331 }
 0x7ac   :  { %v2746_v14 = vsub.f32 %v1323_v29, %v1333_v12  ;;  %v2748_v15 = vsub.f32 %v1324_v51, %v1333_v12  ;;  %v1334_v16 = vmul.f32 0.00390625, %v1332_v13  ;;  %v2458_v29 = vld [vmem:[#allocation6 + $0x530] ss:$8 sps:$4 sm:$0xff]   ;;  %v2466_v51 = vld [vmem:[#allocation6 + $0x554] ss:$8 sps:$4 sm:$0xff]   ;;  %v1367_v12 = vrot.slane %v1063_v9, %v2704_v40 }
 0x7ad   :  { %1855 = vmatpush1.bf16.msra.mxu0 %v2458_v29 }
 0x7ae   :  { %v2750_v17 = vsub.f32 %v1325_v53, %v1334_v16  ;;  %v2752_v18 = vsub.f32 %v1326_v54, %v1334_v16  ;;  %v1339_v19 = vmul.f32 %v2746_v14, %v2746_v14  ;;  %v1340_v20 = vmul.f32 %v2748_v15, %v2748_v15  ;;  %1856 = vmatprep.subr.bf16.mxu0 %v2463_v49  ;;  %v2469_v53 = vld [vmem:[#allocation6 + $0x564] ss:$8 sps:$4 sm:$0xff]   ;;  %v2467_v54 = vld [vmem:[#allocation6 + $0x560] ss:$8 sps:$4 sm:$0xff]  }
 0x7b0   :  { %v1343_v21 = vadd.f32 %v1340_v20, %v1339_v19  ;;  %v1341_v22 = vmul.f32 %v2750_v17, %v2750_v17  ;;  %v1342_v23 = vmul.f32 %v2752_v18, %v2752_v18 }
 0x7b1   :  { %1857 = vmatpush1.bf16.msra.mxu0 %v2461_v50 }
 0x7b2   :  { %1344 = vadd.xlane.f32.xlu0 %v1343_v21  ;;  %v1346_v24 = vadd.f32 %v1342_v23, %v1341_v22  ;;  %1858 = vmatprep.subr.bf16.mxu0 %v2466_v51  ;;  %v1378_v21 = vrot.slane %v1065_v10, %v2706_v42  ;;  %v1382_v22 = vrot.slane %v1065_v10, %v2704_v40 }
 0x7b4   :  { %1347 = vadd.xlane.f32.xlu1 %v1346_v24 }
 0x7b5   :  { %1859 = vmatpush1.bf16.msra.mxu0 %v2464_v52 }
 0x7b6   :  { %1860 = vmatprep.subr.bf16.mxu0 %v2469_v53 }
 0x7b9   :  { %1861 = vmatpush1.bf16.msra.mxu0 %v2467_v54 }
 0x7ba   :  { %1862 = vmatprep.subr.bf16.mxu0 %v2472_v34 }
 0x7bd   :  { %1863 = vmatpush1.bf16.msra.mxu0 %v2470_v35  ;;  %v1069_v35 = vld [vmem:[#allocation7 + $0x16] ss:$8 sm:$0x3] }
 0x7be   :  { %1864 = vmatprep.subr.bf16.mxu0 %v2475_v55  ;;  %v1681_v55 = vrot.slane %v1069_v35, %v2706_v42 }
 0x7c1   :  { %1865 = vmatpush1.bf16.msra.mxu0 %v2473_v56  ;;  %v1685_v56 = vrot.slane %v1069_v35, %v2704_v40 }
 0x7c2   :  { %1866 = vmatprep.subr.bf16.mxu0 %v2478_v57 }
 0x7c5   :  { %1867 = vmatpush1.bf16.msra.mxu0 %v2476_v58 }
 0x7c6   :  { %1868 = vmatprep.subr.bf16.mxu0 %v2481_v59 }
 0x7c9   :  { %1869 = vmatpush1.bf16.msra.mxu0 %v2479_v60 }
 0x7ca   :  { %1870 = vmatprep.subr.bf16.mxu0 %v2484_v61 }
 0x7cd   :  { %1871 = vmatpush1.bf16.msra.mxu0 %v2482_v62 }
 0x7ce   :  { %1872 = vmatprep.subr.bf16.mxu0 %v2487_v63 }
 0x7d1   :  { %1873 = vmatpush1.bf16.msra.mxu0 %v2485_v0 }
 0x7d2   :  { %1874 = vmatprep.subr.bf16.mxu0 %v2490_v1 }
 0x7d5   :  { %1875 = vmatpush1.bf16.msra.mxu0 %v2488_v2 }
 0x83f   :  { %v1345_v3 = vpop.xlane.xlu0 %1344 }
 0x840   :  { %v1349_v4 = vmul.f32 0.00390625, %v1345_v3 }
 0x841   :  { %v1348_v5 = vpop.xlane.xlu1 %1347 }
 0x842   :  { %v1351_v6 = vadd.f32 1e-05, %v1349_v4  ;;  %v1350_v7 = vmul.f32 0.00390625, %v1348_v5 }
 0x844   :  { %2505 = vrsqrt.f32 %v1351_v6  ;;  %v1352_v8 = vadd.f32 1e-05, %v1350_v7 }
 0x846   :  { %2507 = vrsqrt.f32 %v1352_v8 }
 0x84e   :  { %v2506_v13 = vpop.eup %2505 }
 0x84f   :  { %v1355_v16 = vmul.f32 %v2506_v13, %v2746_v14  ;;  %v1356_v19 = vmul.f32 %v2506_v13, %v2748_v15  ;;  %v2493_v15 = vld [vmem:[#allocation6 + $0x5e4] ss:$8 sps:$4 sm:$0xff]  }
 0x850   :  { %v2508_v20 = vpop.eup %2507  ;;  %1876 = vmatprep.subr.bf16.mxu0 %v2493_v15  ;;  %v1958_v15 = vld [vmem:[#allocation7 + $0x1] ss:$8 sm:$0x3] }
 0x851   :  { %v1357_v23 = vmul.f32 %v2508_v20, %v2750_v17  ;;  %v1358_v24 = vmul.f32 %v2508_v20, %v2752_v18  ;;  %v1371_v25 = vmul.f32 %v1367_v12, %v1356_v19  ;;  %v1370_v26 = vmul.f32 %v1363_v11, %v1355_v16  ;;  %1877 = vmatpush1.bf16.msra.mxu0 %v2491_v38  ;;  %v2494_v17 = vld [vmem:[#allocation6 + $0x5f0] ss:$8 sps:$4 sm:$0xff]   ;;  %v1067_v18 = vld [vmem:[#allocation7 + $0x15] ss:$8 sm:$0x3] }
 0x852   :  { %1878 = vmatprep.subr.bf16.mxu0 %v2496_v39  ;;  %v1428_v41 = vrot.slane %v1067_v18, %v2706_v42  ;;  %v1432_v43 = vrot.slane %v1067_v18, %v2704_v40 }
 0x853   :  { %v1373_v27 = vmul.f32 %v1367_v12, %v1358_v24  ;;  %v1372_v30 = vmul.f32 %v1363_v11, %v1357_v23  ;;  %v1386_v31 = vadd.f32 %v1382_v22, %v1371_v25  ;;  %v1385_v33 = vadd.f32 %v1378_v21, %v1370_v26 }
 0x855   :  { %v1388_v32 = vadd.f32 %v1382_v22, %v1373_v27  ;;  %v1387_v36 = vadd.f32 %v1378_v21, %v1372_v30  ;;  %1879 = vmatpush1.bf16.msra.mxu0 %v2494_v17 }
 0x857   :  { %v1390_v14 = vpack.c.bf16 %v1388_v32, %v1386_v31  ;;  %v1389_v37 = vpack.c.bf16 %v1387_v36, %v1385_v33 }
 0x859   :  { %1627 = vmatprep.mubr.bf16.mxu1 %v1390_v14 }
 0x85a   :  { %1628 = vmatmul.mubr.bf16.vlgmr.msra.gmra.mrb[8].mxu1 %v1389_v37 }
 0x92d   :  { %v1629_v44 = vpop.f32.mrb[8].mxu1 }
 0x92e   :  { %v1630_v45 = vadd.f32 %v1629_v44, %v1428_v41  ;;  %v1631_v46 = vpop.f32.mrb[9].mxu1  ;;  %v1964_v44 = vrot.slane %v1958_v15, %v2706_v42 }
 0x92f   :  { %v1632_v28 = vadd.f32 %v1631_v46, %v1432_v43  ;;  %v1633_v47 = vpop.f32.mrb[10].mxu1 }
 0x930   :  { %v1634_v48 = vadd.f32 %v1633_v47, %v1428_v41  ;;  %v1635_v29 = vpop.f32.mrb[11].mxu1  ;;  %v1638_v50 = vmax.f32 %v1630_v45, 0.0  ;;  %v1968_v45 = vrot.slane %v1958_v15, %v2704_v40 }
 0x931   :  { %v1636_v49 = vadd.f32 %v1635_v29, %v1432_v43  ;;  %v1639_v52 = vmax.f32 %v1632_v28, 0.0 }
 0x932   :  { %v1640_v51 = vmax.f32 %v1634_v48, 0.0 }
 0x933   :  { %v1641_v53 = vmax.f32 %v1636_v49, 0.0 }
 0x934   :  { %v1642_v54 = vpack.c.bf16 %v1640_v51, %v1638_v50 }
 0x935   :  { %v1643_v34 = vpack.c.bf16 %v1641_v53, %v1639_v52 }
 0x937   :  { %1880 = vmatprep.mubr.bf16.mxu0 %v1643_v34 }
 0x938   :  { %1881 = vmatmul.mubr.bf16.vlgmr.msra.gmra.mrb[12].mxu0 %v1642_v54 }
 0xa0b   :  { %v1882_v57 = vpop.f32.mrb[12].mxu0 }
 0xa0c   :  { %v1883_v58 = vadd.f32 %v1882_v57, %v1681_v55  ;;  %v1884_v59 = vpop.f32.mrb[13].mxu0 }
 0xa0d   :  { %v1885_v60 = vadd.f32 %v1884_v59, %v1685_v56  ;;  %v1886_v61 = vpop.f32.mrb[14].mxu0 }
 0xa0e   :  { %v1891_v62 = vadd.f32 %v1883_v58, %v1385_v33  ;;  %v1887_v63 = vadd.f32 %v1886_v61, %v1681_v55  ;;  %v1888_v0 = vpop.f32.mrb[15].mxu0  ;;  %v1071_v33 = vld [vmem:[#allocation7 + $0x17] ss:$8 sm:$0x3] }
 0xa0f   :  { %v1892_v1 = vadd.f32 %v1885_v60, %v1386_v31  ;;  %v1889_v2 = vadd.f32 %v1888_v0, %v1685_v56  ;;  %v1931_v14 = vrot.slane %v1071_v33, %v2706_v42  ;;  %v1935_v37 = vrot.slane %v1071_v33, %v2704_v40 }
 0xa10   :  { %v1893_v3 = vadd.f32 %v1887_v63, %v1387_v36  ;;  %v1073_v36 = vld [vmem:[#allocation7 + $0x20] ss:$8 sm:$0x3] }
 0xa11   :  { %v1894_v4 = vadd.f32 %v1889_v2, %v1388_v32  ;;  %v1895_v5 = vadd.f32 %v1892_v1, %v1891_v62  ;;  %v1946_v18 = vrot.slane %v1073_v36, %v2706_v42  ;;  %v1950_v41 = vrot.slane %v1073_v36, %v2704_v40  ;;  %v1959_v42 = vld [vmem:[#allocation7 + $0x2] ss:$0 sm:$0xff] }
 0xa13   :  { %1896 = vadd.xlane.f32.xlu0 %v1895_v5  ;;  %v1898_v6 = vadd.f32 %v1894_v4, %v1893_v3 }
 0xa15   :  { %1899 = vadd.xlane.f32.xlu1 %v1898_v6 }
 0xaa0   :  { %v1897_v7 = vpop.xlane.xlu0 %1896 }
 0xaa1   :  { %v1901_v8 = vmul.f32 0.00390625, %v1897_v7 }
 0xaa2   :  { %v1900_v9 = vpop.xlane.xlu1 %1899 }
 0xaa3   :  { %v1903_v10 = vsub.f32 %v1891_v62, %v1901_v8  ;;  %v1904_v11 = vsub.f32 %v1892_v1, %v1901_v8  ;;  %v1902_v12 = vmul.f32 0.00390625, %v1900_v9 }
 0xaa5   :  { %v1905_v13 = vsub.f32 %v1893_v3, %v1902_v12  ;;  %v1906_v16 = vsub.f32 %v1894_v4, %v1902_v12  ;;  %v1907_v19 = vmul.f32 %v1903_v10, %v1903_v10  ;;  %v1908_v20 = vmul.f32 %v1904_v11, %v1904_v11 }
 0xaa7   :  { %v1911_v21 = vadd.f32 %v1908_v20, %v1907_v19  ;;  %v1909_v22 = vmul.f32 %v1905_v13, %v1905_v13  ;;  %v1910_v23 = vmul.f32 %v1906_v16, %v1906_v16 }
 0xaa9   :  { %1912 = vadd.xlane.f32.xlu0 %v1911_v21  ;;  %v1914_v24 = vadd.f32 %v1910_v23, %v1909_v22 }
 0xaab   :  { %1915 = vadd.xlane.f32.xlu1 %v1914_v24 }
 0xb36   :  { %v1913_v25 = vpop.xlane.xlu0 %1912 }
 0xb37   :  { %v1917_v26 = vmul.f32 0.00390625, %v1913_v25 }
 0xb38   :  { %v1916_v27 = vpop.xlane.xlu1 %1915 }
 0xb39   :  { %v1919_v30 = vadd.f32 1e-05, %v1917_v26  ;;  %v1918_v31 = vmul.f32 0.00390625, %v1916_v27 }
 0xb3b   :  { %2509 = vrsqrt.f32 %v1919_v30  ;;  %v1920_v32 = vadd.f32 1e-05, %v1918_v31 }
 0xb3d   :  { %2511 = vrsqrt.f32 %v1920_v32 }
 0xb45   :  { %v2510_v38 = vpop.eup %2509 }
 0xb46   :  { %v1923_v39 = vmul.f32 %v2510_v38, %v1903_v10  ;;  %v1924_v17 = vmul.f32 %v2510_v38, %v1904_v11 }
 0xb47   :  { %v2512_v43 = vpop.eup %2511 }
 0xb48   :  { %v1938_v46 = vmul.f32 %v1931_v14, %v1923_v39  ;;  %v1939_v28 = vmul.f32 %v1935_v37, %v1924_v17  ;;  %v1925_v47 = vmul.f32 %v2512_v43, %v1905_v13  ;;  %v1926_v48 = vmul.f32 %v2512_v43, %v1906_v16 }
 0xb4a   :  { %v1953_v29 = vadd.f32 %v1946_v18, %v1938_v46  ;;  %v1954_v49 = vadd.f32 %v1950_v41, %v1939_v28  ;;  %v1940_v50 = vmul.f32 %v1931_v14, %v1925_v47  ;;  %v1941_v51 = vmul.f32 %v1935_v37, %v1926_v48 }
 0xb4c   :  { %v1971_v52 = vmul.f32 %v1964_v44, %v1953_v29  ;;  %v1972_v53 = vmul.f32 %v1968_v45, %v1954_v49  ;;  %v1955_v54 = vadd.f32 %v1946_v18, %v1940_v50  ;;  %v1956_v34 = vadd.f32 %v1950_v41, %v1941_v51 }
 0xb4e   :  { %v1975_v35 = vadd.f32 %v1972_v53, %v1971_v52  ;;  %v1973_v55 = vmul.f32 %v1964_v44, %v1955_v54  ;;  %v1974_v56 = vmul.f32 %v1968_v45, %v1956_v34 }
 0xb50   :  { %1976 = vadd.xlane.f32.xlu0 %v1975_v35  ;;  %v1978_v57 = vadd.f32 %v1974_v56, %v1973_v55 }
 0xb52   :  { %1979 = vadd.xlane.f32.xlu1 %v1978_v57 }
 0xbdd   :  { %v1977_v40 = vpop.xlane.xlu0 %1976 }
 0xbde   :  { %v1981_v58 = vadd.f32 %v1977_v40, %v1959_v42 }
 0xbdf   :  { %v1980_v59 = vpop.xlane.xlu1 %1979 }
 0xbe0   :  { %1984 = vst.msk [vmem:[%s2790_s4] sm:$0xff] %vm1983_vm1, %v1981_v58  ;;  %v1982_v60 = vadd.f32 %v1980_v59, %v1959_v42 }
 0xbe2   :  { %1985 = vst.msk [vmem:[%s2790_s4 + $0x8] sm:$0xff] %vm1983_vm1, %v1982_v60 }
 0xbe3   :  { %1990 = vsyncpa [#allocation3], 1 }
 0xbe4   :  { %1991 = vsyncpa [#allocation5], 1 }
 0xbe5   :  { %1992 = vsyncpa [#allocation8], 1 }

</bundles_post_ra>
